<compile_context>
chip_gen: v7x
topology: tpu7x:2x2x1
jax: 0.10.0
libtpu: 0.0.40
codegen_flags: <defaults>
</compile_context>

<pallas_src>
import jax
import jax.numpy as jnp
from jax.experimental import pallas as pl
from jax.experimental.pallas import tpu as pltpu

# ----------------------------- config ---------------------------------------
HIDDEN       = 32            # stands in for self.BERT_SIZE = 768
INTERMEDIATE = 64
NUM_LAYERS   = 12            # encoded_layers[4], [8], [-1] are all valid
NUM_HEADS    = 4
HEAD_DIM     = HIDDEN // NUM_HEADS
VOCAB        = 128
MAX_POS      = 40            # bert.config.max_position_embeddings
QLEN         = 20
DIFF         = 3
MAX_DLEN     = MAX_POS - QLEN - DIFF
CLS_ID       = 1
SEP_ID       = 2
LN_EPS       = 1e-12
FC1, FC2, OUT = 100, 10, 1
FC_PAD       = 128           # head dims zero-padded to a lane-dense 128


# --------------------------- in-kernel helpers -------------------------------
def _layernorm(x, g, b):
    mu = jnp.mean(x, axis=-1, keepdims=True)
    var = jnp.mean((x - mu) ** 2, axis=-1, keepdims=True)
    return (x - mu) * jax.lax.rsqrt(var + LN_EPS) * g + b


def _gelu(x):
    # TODO(synk): BERT uses exact erf-GELU; tanh approximation used here (Mosaic-friendly).
    c = 0.7978845608028654  # sqrt(2/pi)
    return 0.5 * x * (1.0 + jnp.tanh(c * (x + 0.044715 * x * x * x)))


# --------------------- fused encoder (+ head) kernel --------------------------
# grid = (B, NUM_LAYERS); axis 0 "parallel" (megacore), axis 1 "arbitrary" (layers).
# x is carried across layers in the VMEM scratch x_scr; the score head runs on the
# last layer step under pl.when and writes the (lane-dense, padded) output block.
def fused_bert_kernel(x_ref, bias_ref, hm_ref,
                      wqkv_ref, bqkv_ref, wo_ref, w1_ref, b1_ref, w2_ref, ln_ref,
                      wh1_ref, wh2_ref, wh3_ref, bh_ref,
                      o_ref, x_scr):
    l = pl.program_id(1)

    @pl.when(l == 0)
    def _():
        x_scr[...] = x_ref[...]          # load embeddings for this batch element

    x = x_scr[...]                       # [1, S, H]  f32
    bias = bias_ref[...]                 # [1, 1, S]  additive mask = (1-m)*-10000
    hm = hm_ref[...]                     # [nH*S, H]  block-diagonal head mask
    ln = ln_ref[...]                     # [6, H]: bo, g1, be1, b2, g2, be2
    S = x.shape[1]

    # ---- fused QKV projection (bf16 inputs, f32 accumulation) ----
    x16 = x.astype(jnp.bfloat16)
    qkv = jnp.einsum('bsh,hd->bsd', x16, wqkv_ref[...],
                     preferred_element_type=jnp.float32) + bqkv_ref[...]   # [1,S,3H]
    q = qkv[:, :, 0:HIDDEN]
    k = qkv[:, :, HIDDEN:2 * HIDDEN]
    v = qkv[:, :, 2 * HIDDEN:3 * HIDDEN]

    # ---- all heads at once ----
    # Tile q along sublanes (one copy per head) and mask each copy to its head's
    # lane block; one [nH*S, S] matmul + one softmax covers every head.
    q_bd = (jnp.concatenate([q] * NUM_HEADS, axis=1) * hm).astype(jnp.bfloat16)
    k16 = k.astype(jnp.bfloat16)
    v16 = v.astype(jnp.bfloat16)

    scale = 1.0 / (HEAD_DIM ** 0.5)
    s = jnp.einsum('bqh,bkh->bqk', q_bd, k16,
                   preferred_element_type=jnp.float32) * scale + bias      # [1,nH*S,S]
    s = s - jnp.max(s, axis=-1, keepdims=True)
    p = jnp.exp(s)
    p = p * pl.reciprocal(jnp.sum(p, axis=-1, keepdims=True), approx=True)

    ctx_all = jnp.einsum('bqk,bkh->bqh', p.astype(jnp.bfloat16), v16,
                         preferred_element_type=jnp.float32) * hm          # [1,nH*S,H]
    # sum the nH sublane chunks -> per-head contexts land in their own lane block,
    # which is exactly the concatenated multi-head context (no concat needed).
    ctx = ctx_all[:, 0:S]
    for n in range(1, NUM_HEADS):
        ctx = ctx + ctx_all[:, n * S:(n + 1) * S]                          # [1, S, H]

    attn = jnp.einsum('bsh,ho->bso', ctx.astype(jnp.bfloat16), wo_ref[...],
                      preferred_element_type=jnp.float32) + ln[0:1]
    h1 = _layernorm(x + attn, ln[1:2], ln[2:3])

    ff = _gelu(jnp.einsum('bsh,hi->bsi', h1.astype(jnp.bfloat16), w1_ref[...],
                          preferred_element_type=jnp.float32) + b1_ref[...])
    ff = jnp.einsum('bsi,ih->bsh', ff.astype(jnp.bfloat16), w2_ref[...],
                    preferred_element_type=jnp.float32) + ln[3:4]
    xo = _layernorm(h1 + ff, ln[4:5], ln[5:6])
    x_scr[...] = xo

    # ---- ranking head on the last layer (cls_reps[-1][:,0]; dropout=identity) ----
    @pl.when(l == NUM_LAYERS - 1)
    def _():
        bh = bh_ref[...]                                 # [3, FC_PAD] biases
        cls = xo[:, 0:1, :].astype(jnp.bfloat16)          # [1, 1, H]
        h = jnp.einsum('bsh,ho->bso', cls, wh1_ref[...],
                       preferred_element_type=jnp.float32) + bh[0:1]
        h = jnp.maximum(h, 0.0).astype(jnp.bfloat16)
        h = jnp.einsum('bsh,ho->bso', h, wh2_ref[...],
                       preferred_element_type=jnp.float32) + bh[1:2]
        h = jnp.maximum(h, 0.0).astype(jnp.bfloat16)
        o_ref[...] = jnp.einsum('bsh,ho->bso', h, wh3_ref[...],
                                preferred_element_type=jnp.float32) + bh[2:3]


def fused_encoder_and_head(x_emb, bias, head_mask, stacks, head):
    B, S_pad, _ = x_emb.shape
    args = (x_emb, bias, head_mask,
            stacks['wqkv'], stacks['bqkv'], stacks['wo'],
            stacks['w1'], stacks['b1'], stacks['w2'], stacks['ln'],
            head['w1'], head['w2'], head['w3'], head['b'])

    per_b  = lambda b, l: (b, 0, 0)
    per_l3 = lambda b, l: (l, 0, 0)
    const2 = lambda b, l: (0, 0)

    in_specs = [
        pl.BlockSpec((1, S_pad, HIDDEN), per_b),                 # embeddings (per batch)
        pl.BlockSpec((1, 1, S_pad), per_b),                      # additive attention bias
        pl.BlockSpec((NUM_HEADS * S_pad, HIDDEN), const2),       # block-diag head mask
        pl.BlockSpec((None, HIDDEN, 3 * HIDDEN), per_l3),        # fused QKV weight  (bf16)
        pl.BlockSpec((None, 1, 3 * HIDDEN), per_l3),             # fused QKV bias
        pl.BlockSpec((None, HIDDEN, HIDDEN), per_l3),            # attn output weight (bf16)
        pl.BlockSpec((None, HIDDEN, INTERMEDIATE), per_l3),      # FFN W1 (bf16)
        pl.BlockSpec((None, 1, INTERMEDIATE), per_l3),           # FFN b1
        pl.BlockSpec((None, INTERMEDIATE, HIDDEN), per_l3),      # FFN W2 (bf16)
        pl.BlockSpec((None, 6, HIDDEN), per_l3),                 # [bo,g1,be1,b2,g2,be2]
        pl.BlockSpec((HIDDEN, FC_PAD), const2),                  # head fc1 weight (padded)
        pl.BlockSpec((FC_PAD, FC_PAD), const2),                  # head fc2 weight (padded)
        pl.BlockSpec((FC_PAD, FC_PAD), const2),                  # head out weight (padded)
        pl.BlockSpec((3, FC_PAD), const2),                       # head biases (padded)
    ]

    out = pl.pallas_call(
        fused_bert_kernel,
        out_shape=jax.ShapeDtypeStruct((B, 1, FC_PAD), jnp.float32),
        grid=(B, NUM_LAYERS),
        in_specs=in_specs,
        out_specs=pl.BlockSpec((1, 1, FC_PAD), per_b),
        scratch_shapes=[pltpu.VMEM((1, S_pad, HIDDEN), jnp.float32)],
        compiler_params=pltpu.CompilerParams(
            dimension_semantics=("parallel", "arbitrary")),
    )(*args)
    return out[:, 0, :OUT]                                       # [B, 1]


# --------------------------- parameter initialization ------------------------
def init_params(key):
    keys = jax.random.split(key, 4 + NUM_LAYERS)

    def nrm(k, shape):
        return 0.02 * jax.random.normal(k, shape, jnp.float32)

    params = {
        'word_emb': nrm(keys[0], (VOCAB, HIDDEN)),
        'pos_emb':  nrm(keys[1], (MAX_POS, HIDDEN)),
        'type_emb': nrm(keys[2], (2, HIDDEN)),
        'emb_g': jnp.ones((HIDDEN,), jnp.float32),
        'emb_b': jnp.zeros((HIDDEN,), jnp.float32),
    }

    wqkv, bqkv, wo, w1, b1, w2, ln = [], [], [], [], [], [], []
    for l in range(NUM_LAYERS):
        lk = jax.random.split(keys[3 + l], 6)
        wq_ = nrm(lk[0], (HIDDEN, HIDDEN))
        wk_ = nrm(lk[1], (HIDDEN, HIDDEN))
        wv_ = nrm(lk[2], (HIDDEN, HIDDEN))
        wqkv.append(jnp.concatenate([wq_, wk_, wv_], axis=1))           # [H, 3H]
        bqkv.append(jnp.zeros((1, 3 * HIDDEN), jnp.float32))
        wo.append(nrm(lk[3], (HIDDEN, HIDDEN)))
        w1.append(nrm(lk[4], (HIDDEN, INTERMEDIATE)))
        b1.append(jnp.zeros((1, INTERMEDIATE), jnp.float32))
        w2.append(nrm(lk[5], (INTERMEDIATE, HIDDEN)))
        # rows: [attn-out bias, LN1 gamma, LN1 beta, FFN-out bias, LN2 gamma, LN2 beta]
        ln.append(jnp.stack([jnp.zeros(HIDDEN), jnp.ones(HIDDEN), jnp.zeros(HIDDEN),
                             jnp.zeros(HIDDEN), jnp.ones(HIDDEN), jnp.zeros(HIDDEN)]))

    params['stacks'] = {
        'wqkv': jnp.stack(wqkv).astype(jnp.bfloat16),
        'bqkv': jnp.stack(bqkv),
        'wo':   jnp.stack(wo).astype(jnp.bfloat16),
        'w1':   jnp.stack(w1).astype(jnp.bfloat16),
        'b1':   jnp.stack(b1),
        'w2':   jnp.stack(w2).astype(jnp.bfloat16),
        'ln':   jnp.stack(ln).astype(jnp.float32),
    }

    # head weights zero-padded to lane-dense 128 (padding columns/rows are exact
    # zeros so they never affect the real score in column 0)
    hk = jax.random.split(keys[3 + NUM_LAYERS], 3)
    w1h = jnp.zeros((HIDDEN, FC_PAD), jnp.float32).at[:, :FC1].set(nrm(hk[0], (HIDDEN, FC1)))
    w2h = jnp.zeros((FC_PAD, FC_PAD), jnp.float32).at[:FC1, :FC2].set(nrm(hk[1], (FC1, FC2)))
    w3h = jnp.zeros((FC_PAD, FC_PAD), jnp.float32).at[:FC2, :OUT].set(nrm(hk[2], (FC2, OUT)))
    params['head'] = {
        'w1': w1h.astype(jnp.bfloat16),
        'w2': w2h.astype(jnp.bfloat16),
        'w3': w3h.astype(jnp.bfloat16),
        'b':  jnp.zeros((3, FC_PAD), jnp.float32),   # rows: fc1 / fc2 / out biases
    }
    return params


# ------------------------------- full forward --------------------------------
def vanilla_bert_ranker_forward(params, query_tok, doc_tok):
    B = query_tok.shape[0]
    dlen = doc_tok.shape[1]
    assert dlen <= MAX_DLEN  # sbcount == 1 -> subbatch / un_subbatch are identities

    qmask = jnp.where(query_tok > 0, 1.0, 0.0).astype(jnp.float32)
    dmask = jnp.where(doc_tok > 0, 1.0, 0.0).astype(jnp.float32)
    CLSS = jnp.full((B, 1), CLS_ID, dtype=query_tok.dtype)
    SEPS = jnp.full((B, 1), SEP_ID, dtype=query_tok.dtype)
    ONES = jnp.ones((B, 1), jnp.float32)

    toks = jnp.concatenate([CLSS, query_tok, SEPS, doc_tok, SEPS], axis=1)
    segs = jnp.concatenate([jnp.zeros((B, 2 + QLEN), jnp.int32),
                            jnp.ones((B, 1 + dlen), jnp.int32)], axis=1)
    masks = jnp.concatenate([ONES, qmask, ONES, dmask, ONES], axis=1)

    # pad S to a multiple of 8 (sublane-friendly); padded keys get the -10000 mask
    # so the padded positions cannot influence any real token -> result unchanged.
    S = toks.shape[1]
    S_pad = ((S + 7) // 8) * 8
    assert S_pad <= MAX_POS
    pad = S_pad - S
    toks = jnp.pad(toks, ((0, 0), (0, pad)))
    segs = jnp.pad(segs, ((0, 0), (0, pad)))
    masks = jnp.pad(masks, ((0, 0), (0, pad)))

    # embeddings (glue: gather + LayerNorm in plain JAX)
    pos = jnp.arange(S_pad)
    emb = (params['word_emb'][toks]
           + params['pos_emb'][pos][None, :, :]
           + params['type_emb'][segs])
    mu = emb.mean(-1, keepdims=True)
    var = ((emb - mu) ** 2).mean(-1, keepdims=True)
    x = (emb - mu) / jnp.sqrt(var + LN_EPS) * params['emb_g'] + params['emb_b']

    # extended attention mask: (1 - mask) * -10000, broadcast over query positions
    bias = ((1.0 - masks) * -10000.0)[:, None, :]              # [B, 1, S_pad]

    # block-diagonal head mask: sublane block n <-> lane block n (head n)
    row_head = jnp.arange(NUM_HEADS * S_pad) // S_pad
    col_head = jnp.arange(HIDDEN) // HEAD_DIM
    head_mask = (row_head[:, None] == col_head[None, :]).astype(jnp.float32)

    # cls_reps[-1]: sbcount == 1, so stack(...).mean(dim=2) == last layer[:, 0];
    # dropout(p=0.1) is identity at inference; encode_bert's query/doc results and
    # intermediate layers 4 & 8 are unused by VanillaBertRanker.forward.
    return fused_encoder_and_head(x, bias, head_mask,
                                  params['stacks'], params['head'])


# ----------------------------------- main -------------------------------------
if __name__ == "__main__":
    key = jax.random.PRNGKey(0)
    pkey, qkey, dkey = jax.random.split(key, 3)
    params = init_params(pkey)

    B, DLEN = 2, 8
    query_tok = jax.random.randint(qkey, (B, QLEN), 3, VOCAB, dtype=jnp.int32)
    doc_tok = jax.random.randint(dkey, (B, DLEN), 3, VOCAB, dtype=jnp.int32)
    doc_tok = doc_tok.at[1, DLEN - 2:].set(0)   # padding -> exercises attention mask

    fwd = jax.jit(vanilla_bert_ranker_forward)
    score = fwd(params, query_tok, doc_tok)
    jax.block_until_ready(score)
    assert score.shape == (B, 1) and score.dtype == jnp.float32
    print("KERNEL_OK")
</pallas_src>

<mosaic_0001>
module attributes {stable_mosaic.version = 11 : i64} {
  func.func @fused_bert_kernel(%arg0: i32, %arg1: i32, %arg2: memref<1x32x32xf32, #tpu.memory_space<vmem>>, %arg3: memref<1x1x32xf32, #tpu.memory_space<vmem>>, %arg4: memref<128x32xf32, #tpu.memory_space<vmem>>, %arg5: memref<1x32x96xbf16, #tpu.memory_space<vmem>>, %arg6: memref<1x1x96xf32, #tpu.memory_space<vmem>>, %arg7: memref<1x32x32xbf16, #tpu.memory_space<vmem>>, %arg8: memref<1x32x64xbf16, #tpu.memory_space<vmem>>, %arg9: memref<1x1x64xf32, #tpu.memory_space<vmem>>, %arg10: memref<1x64x32xbf16, #tpu.memory_space<vmem>>, %arg11: memref<1x6x32xf32, #tpu.memory_space<vmem>>, %arg12: memref<32x128xbf16, #tpu.memory_space<vmem>>, %arg13: memref<128x128xbf16, #tpu.memory_space<vmem>>, %arg14: memref<128x128xbf16, #tpu.memory_space<vmem>>, %arg15: memref<3x128xf32, #tpu.memory_space<vmem>>, %arg16: memref<1x1x128xf32, #tpu.memory_space<vmem>>, %arg17: memref<1x32x32xf32, #tpu.memory_space<vmem>>) attributes {dimension_semantics = [#tpu.dimension_semantics<parallel>, #tpu.dimension_semantics<arbitrary>], iteration_bounds = array<i64: 2, 12>, scalar_prefetch = 0 : i64, scratch_operands = 1 : i64, tpu.core_type = #tpu.core_type<tc>, window_params = [{transform_indices = @transform_0, window_bounds = array<i64: 1, 32, 32>}, {transform_indices = @transform_1, window_bounds = array<i64: 1, 1, 32>}, {pipeline_mode = #tpu.pipeline_mode<synchronous>, transform_indices = @transform_2, window_bounds = array<i64: 128, 32>}, {transform_indices = @transform_3, window_bounds = array<i64: 1, 32, 96>}, {transform_indices = @transform_4, window_bounds = array<i64: 1, 1, 96>}, {transform_indices = @transform_5, window_bounds = array<i64: 1, 32, 32>}, {transform_indices = @transform_6, window_bounds = array<i64: 1, 32, 64>}, {transform_indices = @transform_7, window_bounds = array<i64: 1, 1, 64>}, {transform_indices = @transform_8, window_bounds = array<i64: 1, 64, 32>}, {transform_indices = @transform_9, window_bounds = array<i64: 1, 6, 32>}, {pipeline_mode = #tpu.pipeline_mode<synchronous>, transform_indices = @transform_10, window_bounds = array<i64: 32, 128>}, {pipeline_mode = #tpu.pipeline_mode<synchronous>, transform_indices = @transform_11, window_bounds = array<i64: 128, 128>}, {pipeline_mode = #tpu.pipeline_mode<synchronous>, transform_indices = @transform_12, window_bounds = array<i64: 128, 128>}, {pipeline_mode = #tpu.pipeline_mode<synchronous>, transform_indices = @transform_13, window_bounds = array<i64: 3, 128>}, {transform_indices = @transform_14, window_bounds = array<i64: 1, 1, 128>}]} {
    %c0_i32 = arith.constant 0 : i32
    %0 = arith.cmpi eq, %arg1, %c0_i32 : i32
    %1 = arith.extui %0 : i1 to i32
    %c0_i32_0 = arith.constant 0 : i32
    %2 = arith.cmpi ne, %1, %c0_i32_0 : i32
    scf.if %2 {
      %c0_55 = arith.constant 0 : index
      %c0_56 = arith.constant 0 : index
      %c0_57 = arith.constant 0 : index
      %148 = vector.load %arg2[%c0_55, %c0_56, %c0_57] : memref<1x32x32xf32, #tpu.memory_space<vmem>>, vector<1x32x32xf32>
      %c0_58 = arith.constant 0 : index
      %c0_59 = arith.constant 0 : index
      %c0_60 = arith.constant 0 : index
      %149 = vector.load %arg17[%c0_58, %c0_59, %c0_60] : memref<1x32x32xf32, #tpu.memory_space<vmem>>, vector<1x32x32xf32>
      tpu.vector_store %arg17[%c0_58, %c0_59, %c0_60], %148 {strides = array<i32>} : memref<1x32x32xf32, #tpu.memory_space<vmem>>, vector<1x32x32xf32>,
    } else {
    }
    %c0 = arith.constant 0 : index
    %c0_1 = arith.constant 0 : index
    %c0_2 = arith.constant 0 : index
    %3 = vector.load %arg17[%c0, %c0_1, %c0_2] : memref<1x32x32xf32, #tpu.memory_space<vmem>>, vector<1x32x32xf32>
    %c0_3 = arith.constant 0 : index
    %c0_4 = arith.constant 0 : index
    %c0_5 = arith.constant 0 : index
    %4 = vector.load %arg3[%c0_3, %c0_4, %c0_5] : memref<1x1x32xf32, #tpu.memory_space<vmem>>, vector<1x1x32xf32>
    %c0_6 = arith.constant 0 : index
    %c0_7 = arith.constant 0 : index
    %5 = vector.load %arg4[%c0_6, %c0_7] : memref<128x32xf32, #tpu.memory_space<vmem>>, vector<128x32xf32>
    %c0_8 = arith.constant 0 : index
    %c0_9 = arith.constant 0 : index
    %c0_10 = arith.constant 0 : index
    %6 = vector.load %arg11[%c0_8, %c0_9, %c0_10] : memref<1x6x32xf32, #tpu.memory_space<vmem>>, vector<1x6x32xf32>
    %7 = vector.shape_cast %6 : vector<1x6x32xf32> to vector<6x32xf32>
    %8 = arith.truncf %3 : vector<1x32x32xf32> to vector<1x32x32xbf16>
    %c0_11 = arith.constant 0 : index
    %c0_12 = arith.constant 0 : index
    %c0_13 = arith.constant 0 : index
    %9 = vector.load %arg5[%c0_11, %c0_12, %c0_13] : memref<1x32x96xbf16, #tpu.memory_space<vmem>>, vector<1x32x96xbf16>
    %10 = vector.shape_cast %9 : vector<1x32x96xbf16> to vector<32x96xbf16>
    "tpu.trace_start"() <{level = 10 : i32, message = "bsh,hd->bsd"}> : () -> ()
    %cst = arith.constant dense<0.000000e+00> : vector<1x32x96xf32>
    %11 = tpu.matmul %8, %10, %cst {dimension_numbers = #tpu.dot_dimension_numbers<[2], [0], [0, 1], [1], [0, 0, 0, 1, 1, 1], [], []>} : vector<1x32x32xbf16>, vector<32x96xbf16>, vector<1x32x96xf32> -> vector<1x32x96xf32>
    "tpu.trace_stop"() : () -> ()
    %c0_14 = arith.constant 0 : index
    %c0_15 = arith.constant 0 : index
    %c0_16 = arith.constant 0 : index
    %12 = vector.load %arg6[%c0_14, %c0_15, %c0_16] : memref<1x1x96xf32, #tpu.memory_space<vmem>>, vector<1x1x96xf32>
    %13 = vector.shape_cast %12 : vector<1x1x96xf32> to vector<1x96xf32>
    %14 = vector.shape_cast %13 : vector<1x96xf32> to vector<1x1x96xf32>
    %15 = vector.broadcast %14 : vector<1x1x96xf32> to vector<1x32x96xf32>
    %16 = arith.addf %11, %15 : vector<1x32x96xf32>
    %17 = vector.extract_strided_slice %16 {offsets = [0, 0, 0], sizes = [1, 32, 32], strides = [1, 1, 1]} : vector<1x32x96xf32> to vector<1x32x32xf32>
    %18 = vector.extract_strided_slice %16 {offsets = [0, 0, 32], sizes = [1, 32, 32], strides = [1, 1, 1]} : vector<1x32x96xf32> to vector<1x32x32xf32>
    %19 = vector.extract_strided_slice %16 {offsets = [0, 0, 64], sizes = [1, 32, 32], strides = [1, 1, 1]} : vector<1x32x96xf32> to vector<1x32x32xf32>
    %20 = tpu.concatenate %17, %17, %17, %17 in 1 : vector<1x32x32xf32>, vector<1x32x32xf32>, vector<1x32x32xf32>, vector<1x32x32xf32> -> vector<1x128x32xf32>
    %21 = vector.shape_cast %5 : vector<128x32xf32> to vector<1x128x32xf32>
    %22 = arith.mulf %20, %21 : vector<1x128x32xf32>
    %23 = arith.truncf %22 : vector<1x128x32xf32> to vector<1x128x32xbf16>
    %24 = arith.truncf %18 : vector<1x32x32xf32> to vector<1x32x32xbf16>
    %25 = arith.truncf %19 : vector<1x32x32xf32> to vector<1x32x32xbf16>
    "tpu.trace_start"() <{level = 10 : i32, message = "bqh,bkh->bqk"}> : () -> ()
    %cst_17 = arith.constant dense<0.000000e+00> : vector<1x128x32xf32>
    %26 = tpu.matmul %23, %24, %cst_17 {dimension_numbers = #tpu.dot_dimension_numbers<[2], [2], [1], [1], [0, 0, 0, 1, 1, 1], [0], [0]>} : vector<1x128x32xbf16>, vector<1x32x32xbf16>, vector<1x128x32xf32> -> vector<1x128x32xf32>
    "tpu.trace_stop"() : () -> ()
    %cst_18 = arith.constant 0.353553385 : f32
    %27 = vector.broadcast %cst_18 : f32 to vector<1x128x32xf32>
    %28 = arith.mulf %26, %27 : vector<1x128x32xf32>
    %29 = vector.broadcast %4 : vector<1x1x32xf32> to vector<1x128x32xf32>
    %30 = arith.addf %28, %29 : vector<1x128x32xf32>
    %cst_19 = arith.constant dense<0xFF800000> : vector<1x128xf32>
    %31 = vector.multi_reduction <maximumf>, %30, %cst_19 [2] : vector<1x128x32xf32> to vector<1x128xf32>
    %32 = vector.shape_cast %31 : vector<1x128xf32> to vector<1x128x1xf32>
    %33 = vector.broadcast %32 : vector<1x128x1xf32> to vector<1x128x32xf32>
    %34 = arith.subf %30, %33 : vector<1x128x32xf32>
    %35 = math.exp %34 : vector<1x128x32xf32>
    %cst_20 = arith.constant dense<0.000000e+00> : vector<1x128xf32>
    %36 = vector.multi_reduction <add>, %35, %cst_20 [2] : vector<1x128x32xf32> to vector<1x128xf32>
    %37 = vector.shape_cast %36 : vector<1x128xf32> to vector<1x128x1xf32>
    %38 = tpu.reciprocal %37 {approx = true} : vector<1x128x1xf32> -> vector<1x128x1xf32>
    %39 = vector.broadcast %38 : vector<1x128x1xf32> to vector<1x128x32xf32>
    %40 = arith.mulf %35, %39 : vector<1x128x32xf32>
    %41 = arith.truncf %40 : vector<1x128x32xf32> to vector<1x128x32xbf16>
    "tpu.trace_start"() <{level = 10 : i32, message = "bqk,bkh->bqh"}> : () -> ()
    %cst_21 = arith.constant dense<0.000000e+00> : vector<1x128x32xf32>
    %42 = tpu.matmul %41, %25, %cst_21 {dimension_numbers = #tpu.dot_dimension_numbers<[2], [1], [1], [2], [0, 0, 0, 1, 1, 2], [0], [0]>} : vector<1x128x32xbf16>, vector<1x32x32xbf16>, vector<1x128x32xf32> -> vector<1x128x32xf32>
    "tpu.trace_stop"() : () -> ()
    %43 = vector.shape_cast %5 : vector<128x32xf32> to vector<1x128x32xf32>
    %44 = arith.mulf %42, %43 : vector<1x128x32xf32>
    %45 = vector.extract_strided_slice %44 {offsets = [0, 0, 0], sizes = [1, 32, 32], strides = [1, 1, 1]} : vector<1x128x32xf32> to vector<1x32x32xf32>
    %46 = vector.extract_strided_slice %44 {offsets = [0, 32, 0], sizes = [1, 32, 32], strides = [1, 1, 1]} : vector<1x128x32xf32> to vector<1x32x32xf32>
    %47 = arith.addf %45, %46 : vector<1x32x32xf32>
    %48 = vector.extract_strided_slice %44 {offsets = [0, 64, 0], sizes = [1, 32, 32], strides = [1, 1, 1]} : vector<1x128x32xf32> to vector<1x32x32xf32>
    %49 = arith.addf %47, %48 : vector<1x32x32xf32>
    %50 = vector.extract_strided_slice %44 {offsets = [0, 96, 0], sizes = [1, 32, 32], strides = [1, 1, 1]} : vector<1x128x32xf32> to vector<1x32x32xf32>
    %51 = arith.addf %49, %50 : vector<1x32x32xf32>
    %52 = arith.truncf %51 : vector<1x32x32xf32> to vector<1x32x32xbf16>
    %c0_22 = arith.constant 0 : index
    %c0_23 = arith.constant 0 : index
    %c0_24 = arith.constant 0 : index
    %53 = vector.load %arg7[%c0_22, %c0_23, %c0_24] : memref<1x32x32xbf16, #tpu.memory_space<vmem>>, vector<1x32x32xbf16>
    %54 = vector.shape_cast %53 : vector<1x32x32xbf16> to vector<32x32xbf16>
    "tpu.trace_start"() <{level = 10 : i32, message = "bsh,ho->bso"}> : () -> ()
    %cst_25 = arith.constant dense<0.000000e+00> : vector<1x32x32xf32>
    %55 = tpu.matmul %52, %54, %cst_25 {dimension_numbers = #tpu.dot_dimension_numbers<[2], [0], [0, 1], [1], [0, 0, 0, 1, 1, 1], [], []>} : vector<1x32x32xbf16>, vector<32x32xbf16>, vector<1x32x32xf32> -> vector<1x32x32xf32>
    "tpu.trace_stop"() : () -> ()
    %56 = vector.extract_strided_slice %7 {offsets = [0, 0], sizes = [1, 32], strides = [1, 1]} : vector<6x32xf32> to vector<1x32xf32>
    %57 = vector.shape_cast %56 : vector<1x32xf32> to vector<1x1x32xf32>
    %58 = vector.broadcast %57 : vector<1x1x32xf32> to vector<1x32x32xf32>
    %59 = arith.addf %55, %58 : vector<1x32x32xf32>
    %60 = arith.addf %3, %59 : vector<1x32x32xf32>
    %61 = vector.extract_strided_slice %7 {offsets = [1, 0], sizes = [1, 32], strides = [1, 1]} : vector<6x32xf32> to vector<1x32xf32>
    %62 = vector.extract_strided_slice %7 {offsets = [2, 0], sizes = [1, 32], strides = [1, 1]} : vector<6x32xf32> to vector<1x32xf32>
    %cst_26 = arith.constant dense<0.000000e+00> : vector<1x32xf32>
    %63 = vector.multi_reduction <add>, %60, %cst_26 [2] : vector<1x32x32xf32> to vector<1x32xf32>
    %64 = vector.shape_cast %63 : vector<1x32xf32> to vector<1x32x1xf32>
    %cst_27 = arith.constant 3.200000e+01 : f32
    %65 = vector.broadcast %cst_27 : f32 to vector<1x32x1xf32>
    %66 = arith.divf %64, %65 : vector<1x32x1xf32>
    %67 = vector.broadcast %66 : vector<1x32x1xf32> to vector<1x32x32xf32>
    %68 = arith.subf %60, %67 : vector<1x32x32xf32>
    %69 = arith.mulf %68, %68 : vector<1x32x32xf32>
    %cst_28 = arith.constant dense<0.000000e+00> : vector<1x32xf32>
    %70 = vector.multi_reduction <add>, %69, %cst_28 [2] : vector<1x32x32xf32> to vector<1x32xf32>
    %71 = vector.shape_cast %70 : vector<1x32xf32> to vector<1x32x1xf32>
    %cst_29 = arith.constant 3.200000e+01 : f32
    %72 = vector.broadcast %cst_29 : f32 to vector<1x32x1xf32>
    %73 = arith.divf %71, %72 : vector<1x32x1xf32>
    %74 = vector.broadcast %66 : vector<1x32x1xf32> to vector<1x32x32xf32>
    %75 = arith.subf %60, %74 : vector<1x32x32xf32>
    %cst_30 = arith.constant 9.99999996E-13 : f32
    %76 = vector.broadcast %cst_30 : f32 to vector<1x32x1xf32>
    %77 = arith.addf %73, %76 : vector<1x32x1xf32>
    %78 = math.rsqrt %77 : vector<1x32x1xf32>
    %79 = vector.broadcast %78 : vector<1x32x1xf32> to vector<1x32x32xf32>
    %80 = arith.mulf %75, %79 : vector<1x32x32xf32>
    %81 = vector.shape_cast %61 : vector<1x32xf32> to vector<1x1x32xf32>
    %82 = vector.broadcast %81 : vector<1x1x32xf32> to vector<1x32x32xf32>
    %83 = arith.mulf %80, %82 : vector<1x32x32xf32>
    %84 = vector.shape_cast %62 : vector<1x32xf32> to vector<1x1x32xf32>
    %85 = vector.broadcast %84 : vector<1x1x32xf32> to vector<1x32x32xf32>
    %86 = arith.addf %83, %85 : vector<1x32x32xf32>
    %87 = arith.truncf %86 : vector<1x32x32xf32> to vector<1x32x32xbf16>
    %c0_31 = arith.constant 0 : index
    %c0_32 = arith.constant 0 : index
    %c0_33 = arith.constant 0 : index
    %88 = vector.load %arg8[%c0_31, %c0_32, %c0_33] : memref<1x32x64xbf16, #tpu.memory_space<vmem>>, vector<1x32x64xbf16>
    %89 = vector.shape_cast %88 : vector<1x32x64xbf16> to vector<32x64xbf16>
    "tpu.trace_start"() <{level = 10 : i32, message = "bsh,hi->bsi"}> : () -> ()
    %cst_34 = arith.constant dense<0.000000e+00> : vector<1x32x64xf32>
    %90 = tpu.matmul %87, %89, %cst_34 {dimension_numbers = #tpu.dot_dimension_numbers<[2], [0], [0, 1], [1], [0, 0, 0, 1, 1, 1], [], []>} : vector<1x32x32xbf16>, vector<32x64xbf16>, vector<1x32x64xf32> -> vector<1x32x64xf32>
    "tpu.trace_stop"() : () -> ()
    %c0_35 = arith.constant 0 : index
    %c0_36 = arith.constant 0 : index
    %c0_37 = arith.constant 0 : index
    %91 = vector.load %arg9[%c0_35, %c0_36, %c0_37] : memref<1x1x64xf32, #tpu.memory_space<vmem>>, vector<1x1x64xf32>
    %92 = vector.shape_cast %91 : vector<1x1x64xf32> to vector<1x64xf32>
    %93 = vector.shape_cast %92 : vector<1x64xf32> to vector<1x1x64xf32>
    %94 = vector.broadcast %93 : vector<1x1x64xf32> to vector<1x32x64xf32>
    %95 = arith.addf %90, %94 : vector<1x32x64xf32>
    %cst_38 = arith.constant 5.000000e-01 : f32
    %96 = vector.broadcast %cst_38 : f32 to vector<1x32x64xf32>
    %97 = arith.mulf %96, %95 : vector<1x32x64xf32>
    %cst_39 = arith.constant 4.471500e-02 : f32
    %98 = vector.broadcast %cst_39 : f32 to vector<1x32x64xf32>
    %99 = arith.mulf %98, %95 : vector<1x32x64xf32>
    %100 = arith.mulf %99, %95 : vector<1x32x64xf32>
    %101 = arith.mulf %100, %95 : vector<1x32x64xf32>
    %102 = arith.addf %95, %101 : vector<1x32x64xf32>
    %cst_40 = arith.constant 0.797884583 : f32
    %103 = vector.broadcast %cst_40 : f32 to vector<1x32x64xf32>
    %104 = arith.mulf %103, %102 : vector<1x32x64xf32>
    %105 = math.tanh %104 : vector<1x32x64xf32>
    %cst_41 = arith.constant 1.000000e+00 : f32
    %106 = vector.broadcast %cst_41 : f32 to vector<1x32x64xf32>
    %107 = arith.addf %106, %105 : vector<1x32x64xf32>
    %108 = arith.mulf %97, %107 : vector<1x32x64xf32>
    %109 = arith.truncf %108 : vector<1x32x64xf32> to vector<1x32x64xbf16>
    %c0_42 = arith.constant 0 : index
    %c0_43 = arith.constant 0 : index
    %c0_44 = arith.constant 0 : index
    %110 = vector.load %arg10[%c0_42, %c0_43, %c0_44] : memref<1x64x32xbf16, #tpu.memory_space<vmem>>, vector<1x64x32xbf16>
    %111 = vector.shape_cast %110 : vector<1x64x32xbf16> to vector<64x32xbf16>
    "tpu.trace_start"() <{level = 10 : i32, message = "bsi,ih->bsh"}> : () -> ()
    %cst_45 = arith.constant dense<0.000000e+00> : vector<1x32x32xf32>
    %112 = tpu.matmul %109, %111, %cst_45 {dimension_numbers = #tpu.dot_dimension_numbers<[2], [0], [0, 1], [1], [0, 0, 0, 1, 1, 1], [], []>} : vector<1x32x64xbf16>, vector<64x32xbf16>, vector<1x32x32xf32> -> vector<1x32x32xf32>
    "tpu.trace_stop"() : () -> ()
    %113 = vector.extract_strided_slice %7 {offsets = [3, 0], sizes = [1, 32], strides = [1, 1]} : vector<6x32xf32> to vector<1x32xf32>
    %114 = vector.shape_cast %113 : vector<1x32xf32> to vector<1x1x32xf32>
    %115 = vector.broadcast %114 : vector<1x1x32xf32> to vector<1x32x32xf32>
    %116 = arith.addf %112, %115 : vector<1x32x32xf32>
    %117 = arith.addf %86, %116 : vector<1x32x32xf32>
    %118 = vector.extract_strided_slice %7 {offsets = [4, 0], sizes = [1, 32], strides = [1, 1]} : vector<6x32xf32> to vector<1x32xf32>
    %119 = vector.extract_strided_slice %7 {offsets = [5, 0], sizes = [1, 32], strides = [1, 1]} : vector<6x32xf32> to vector<1x32xf32>
    %cst_46 = arith.constant dense<0.000000e+00> : vector<1x32xf32>
    %120 = vector.multi_reduction <add>, %117, %cst_46 [2] : vector<1x32x32xf32> to vector<1x32xf32>
    %121 = vector.shape_cast %120 : vector<1x32xf32> to vector<1x32x1xf32>
    %cst_47 = arith.constant 3.200000e+01 : f32
    %122 = vector.broadcast %cst_47 : f32 to vector<1x32x1xf32>
    %123 = arith.divf %121, %122 : vector<1x32x1xf32>
    %124 = vector.broadcast %123 : vector<1x32x1xf32> to vector<1x32x32xf32>
    %125 = arith.subf %117, %124 : vector<1x32x32xf32>
    %126 = arith.mulf %125, %125 : vector<1x32x32xf32>
    %cst_48 = arith.constant dense<0.000000e+00> : vector<1x32xf32>
    %127 = vector.multi_reduction <add>, %126, %cst_48 [2] : vector<1x32x32xf32> to vector<1x32xf32>
    %128 = vector.shape_cast %127 : vector<1x32xf32> to vector<1x32x1xf32>
    %cst_49 = arith.constant 3.200000e+01 : f32
    %129 = vector.broadcast %cst_49 : f32 to vector<1x32x1xf32>
    %130 = arith.divf %128, %129 : vector<1x32x1xf32>
    %131 = vector.broadcast %123 : vector<1x32x1xf32> to vector<1x32x32xf32>
    %132 = arith.subf %117, %131 : vector<1x32x32xf32>
    %cst_50 = arith.constant 9.99999996E-13 : f32
    %133 = vector.broadcast %cst_50 : f32 to vector<1x32x1xf32>
    %134 = arith.addf %130, %133 : vector<1x32x1xf32>
    %135 = math.rsqrt %134 : vector<1x32x1xf32>
    %136 = vector.broadcast %135 : vector<1x32x1xf32> to vector<1x32x32xf32>
    %137 = arith.mulf %132, %136 : vector<1x32x32xf32>
    %138 = vector.shape_cast %118 : vector<1x32xf32> to vector<1x1x32xf32>
    %139 = vector.broadcast %138 : vector<1x1x32xf32> to vector<1x32x32xf32>
    %140 = arith.mulf %137, %139 : vector<1x32x32xf32>
    %141 = vector.shape_cast %119 : vector<1x32xf32> to vector<1x1x32xf32>
    %142 = vector.broadcast %141 : vector<1x1x32xf32> to vector<1x32x32xf32>
    %143 = arith.addf %140, %142 : vector<1x32x32xf32>
    %c0_51 = arith.constant 0 : index
    %c0_52 = arith.constant 0 : index
    %c0_53 = arith.constant 0 : index
    %144 = vector.load %arg17[%c0_51, %c0_52, %c0_53] : memref<1x32x32xf32, #tpu.memory_space<vmem>>, vector<1x32x32xf32>
    tpu.vector_store %arg17[%c0_51, %c0_52, %c0_53], %143 {strides = array<i32>} : memref<1x32x32xf32, #tpu.memory_space<vmem>>, vector<1x32x32xf32>,
    %c11_i32 = arith.constant 11 : i32
    %145 = arith.cmpi eq, %arg1, %c11_i32 : i32
    %146 = arith.extui %145 : i1 to i32
    %c0_i32_54 = arith.constant 0 : i32
    %147 = arith.cmpi ne, %146, %c0_i32_54 : i32
    scf.if %147 {
      %c0_55 = arith.constant 0 : index
      %c0_56 = arith.constant 0 : index
      %148 = vector.load %arg15[%c0_55, %c0_56] : memref<3x128xf32, #tpu.memory_space<vmem>>, vector<3x128xf32>
      %149 = vector.extract_strided_slice %143 {offsets = [0, 0, 0], sizes = [1, 1, 32], strides = [1, 1, 1]} : vector<1x32x32xf32> to vector<1x1x32xf32>
      %150 = arith.truncf %149 : vector<1x1x32xf32> to vector<1x1x32xbf16>
      %c0_57 = arith.constant 0 : index
      %c0_58 = arith.constant 0 : index
      %151 = vector.load %arg12[%c0_57, %c0_58] : memref<32x128xbf16, #tpu.memory_space<vmem>>, vector<32x128xbf16>
      "tpu.trace_start"() <{level = 10 : i32, message = "bsh,ho->bso"}> : () -> ()
      %cst_59 = arith.constant dense<0.000000e+00> : vector<1x1x128xf32>
      %152 = tpu.matmul %150, %151, %cst_59 {dimension_numbers = #tpu.dot_dimension_numbers<[2], [0], [0, 1], [1], [0, 0, 0, 1, 1, 1], [], []>} : vector<1x1x32xbf16>, vector<32x128xbf16>, vector<1x1x128xf32> -> vector<1x1x128xf32>
      "tpu.trace_stop"() : () -> ()
      %153 = vector.extract_strided_slice %148 {offsets = [0, 0], sizes = [1, 128], strides = [1, 1]} : vector<3x128xf32> to vector<1x128xf32>
      %154 = vector.shape_cast %153 : vector<1x128xf32> to vector<1x1x128xf32>
      %155 = arith.addf %152, %154 : vector<1x1x128xf32>
      %cst_60 = arith.constant 0.000000e+00 : f32
      %156 = vector.broadcast %cst_60 : f32 to vector<1x1x128xf32>
      %157 = arith.maximumf %155, %156 : vector<1x1x128xf32>
      %158 = arith.truncf %157 : vector<1x1x128xf32> to vector<1x1x128xbf16>
      %c0_61 = arith.constant 0 : index
      %c0_62 = arith.constant 0 : index
      %159 = vector.load %arg13[%c0_61, %c0_62] : memref<128x128xbf16, #tpu.memory_space<vmem>>, vector<128x128xbf16>
      "tpu.trace_start"() <{level = 10 : i32, message = "bsh,ho->bso"}> : () -> ()
      %cst_63 = arith.constant dense<0.000000e+00> : vector<1x1x128xf32>
      %160 = tpu.matmul %158, %159, %cst_63 {dimension_numbers = #tpu.dot_dimension_numbers<[2], [0], [0, 1], [1], [0, 0, 0, 1, 1, 1], [], []>} : vector<1x1x128xbf16>, vector<128x128xbf16>, vector<1x1x128xf32> -> vector<1x1x128xf32>
      "tpu.trace_stop"() : () -> ()
      %161 = vector.extract_strided_slice %148 {offsets = [1, 0], sizes = [1, 128], strides = [1, 1]} : vector<3x128xf32> to vector<1x128xf32>
      %162 = vector.shape_cast %161 : vector<1x128xf32> to vector<1x1x128xf32>
      %163 = arith.addf %160, %162 : vector<1x1x128xf32>
      %cst_64 = arith.constant 0.000000e+00 : f32
      %164 = vector.broadcast %cst_64 : f32 to vector<1x1x128xf32>
      %165 = arith.maximumf %163, %164 : vector<1x1x128xf32>
      %166 = arith.truncf %165 : vector<1x1x128xf32> to vector<1x1x128xbf16>
      %c0_65 = arith.constant 0 : index
      %c0_66 = arith.constant 0 : index
      %167 = vector.load %arg14[%c0_65, %c0_66] : memref<128x128xbf16, #tpu.memory_space<vmem>>, vector<128x128xbf16>
      "tpu.trace_start"() <{level = 10 : i32, message = "bsh,ho->bso"}> : () -> ()
      %cst_67 = arith.constant dense<0.000000e+00> : vector<1x1x128xf32>
      %168 = tpu.matmul %166, %167, %cst_67 {dimension_numbers = #tpu.dot_dimension_numbers<[2], [0], [0, 1], [1], [0, 0, 0, 1, 1, 1], [], []>} : vector<1x1x128xbf16>, vector<128x128xbf16>, vector<1x1x128xf32> -> vector<1x1x128xf32>
      "tpu.trace_stop"() : () -> ()
      %169 = vector.extract_strided_slice %148 {offsets = [2, 0], sizes = [1, 128], strides = [1, 1]} : vector<3x128xf32> to vector<1x128xf32>
      %170 = vector.shape_cast %169 : vector<1x128xf32> to vector<1x1x128xf32>
      %171 = arith.addf %168, %170 : vector<1x1x128xf32>
      %c0_68 = arith.constant 0 : index
      %c0_69 = arith.constant 0 : index
      %c0_70 = arith.constant 0 : index
      %172 = vector.load %arg16[%c0_68, %c0_69, %c0_70] : memref<1x1x128xf32, #tpu.memory_space<vmem>>, vector<1x1x128xf32>
      tpu.vector_store %arg16[%c0_68, %c0_69, %c0_70], %171 {strides = array<i32>} : memref<1x1x128xf32, #tpu.memory_space<vmem>>, vector<1x1x128xf32>,
    } else {
    }
    return
  }
  func.func @transform_0(%arg0: i32, %arg1: i32) -> (i32, i32, i32) {
    %c0_i32 = arith.constant 0 : i32
    %c0_i32_0 = arith.constant 0 : i32
    %c0_i32_1 = arith.constant 0 : i32
    return %arg0, %c0_i32, %c0_i32_0 : i32, i32, i32
  }
  func.func @transform_1(%arg0: i32, %arg1: i32) -> (i32, i32, i32) {
    %c0_i32 = arith.constant 0 : i32
    %c0_i32_0 = arith.constant 0 : i32
    %c0_i32_1 = arith.constant 0 : i32
    return %arg0, %c0_i32, %c0_i32_0 : i32, i32, i32
  }
  func.func @transform_2(%arg0: i32, %arg1: i32) -> (i32, i32) {
    %c0_i32 = arith.constant 0 : i32
    %c0_i32_0 = arith.constant 0 : i32
    %c0_i32_1 = arith.constant 0 : i32
    return %c0_i32, %c0_i32_0 : i32, i32
  }
  func.func @transform_3(%arg0: i32, %arg1: i32) -> (i32, i32, i32) {
    %c0_i32 = arith.constant 0 : i32
    %c0_i32_0 = arith.constant 0 : i32
    %c0_i32_1 = arith.constant 0 : i32
    return %arg1, %c0_i32, %c0_i32_0 : i32, i32, i32
  }
  func.func @transform_4(%arg0: i32, %arg1: i32) -> (i32, i32, i32) {
    %c0_i32 = arith.constant 0 : i32
    %c0_i32_0 = arith.constant 0 : i32
    %c0_i32_1 = arith.constant 0 : i32
    return %arg1, %c0_i32, %c0_i32_0 : i32, i32, i32
  }
  func.func @transform_5(%arg0: i32, %arg1: i32) -> (i32, i32, i32) {
    %c0_i32 = arith.constant 0 : i32
    %c0_i32_0 = arith.constant 0 : i32
    %c0_i32_1 = arith.constant 0 : i32
    return %arg1, %c0_i32, %c0_i32_0 : i32, i32, i32
  }
  func.func @transform_6(%arg0: i32, %arg1: i32) -> (i32, i32, i32) {
    %c0_i32 = arith.constant 0 : i32
    %c0_i32_0 = arith.constant 0 : i32
    %c0_i32_1 = arith.constant 0 : i32
    return %arg1, %c0_i32, %c0_i32_0 : i32, i32, i32
  }
  func.func @transform_7(%arg0: i32, %arg1: i32) -> (i32, i32, i32) {
    %c0_i32 = arith.constant 0 : i32
    %c0_i32_0 = arith.constant 0 : i32
    %c0_i32_1 = arith.constant 0 : i32
    return %arg1, %c0_i32, %c0_i32_0 : i32, i32, i32
  }
  func.func @transform_8(%arg0: i32, %arg1: i32) -> (i32, i32, i32) {
    %c0_i32 = arith.constant 0 : i32
    %c0_i32_0 = arith.constant 0 : i32
    %c0_i32_1 = arith.constant 0 : i32
    return %arg1, %c0_i32, %c0_i32_0 : i32, i32, i32
  }
  func.func @transform_9(%arg0: i32, %arg1: i32) -> (i32, i32, i32) {
    %c0_i32 = arith.constant 0 : i32
    %c0_i32_0 = arith.constant 0 : i32
    %c0_i32_1 = arith.constant 0 : i32
    return %arg1, %c0_i32, %c0_i32_0 : i32, i32, i32
  }
  func.func @transform_10(%arg0: i32, %arg1: i32) -> (i32, i32) {
    %c0_i32 = arith.constant 0 : i32
    %c0_i32_0 = arith.constant 0 : i32
    %c0_i32_1 = arith.constant 0 : i32
    return %c0_i32, %c0_i32_0 : i32, i32
  }
  func.func @transform_11(%arg0: i32, %arg1: i32) -> (i32, i32) {
    %c0_i32 = arith.constant 0 : i32
    %c0_i32_0 = arith.constant 0 : i32
    %c0_i32_1 = arith.constant 0 : i32
    return %c0_i32, %c0_i32_0 : i32, i32
  }
  func.func @transform_12(%arg0: i32, %arg1: i32) -> (i32, i32) {
    %c0_i32 = arith.constant 0 : i32
    %c0_i32_0 = arith.constant 0 : i32
    %c0_i32_1 = arith.constant 0 : i32
    return %c0_i32, %c0_i32_0 : i32, i32
  }
  func.func @transform_13(%arg0: i32, %arg1: i32) -> (i32, i32) {
    %c0_i32 = arith.constant 0 : i32
    %c0_i32_0 = arith.constant 0 : i32
    %c0_i32_1 = arith.constant 0 : i32
    return %c0_i32, %c0_i32_0 : i32, i32
  }
  func.func @transform_14(%arg0: i32, %arg1: i32) -> (i32, i32, i32) {
    %c0_i32 = arith.constant 0 : i32
    %c0_i32_0 = arith.constant 0 : i32
    %c0_i32_1 = arith.constant 0 : i32
    return %arg0, %c0_i32, %c0_i32_0 : i32, i32, i32
  }
}

</mosaic_0001>

<bundles_post_ra>
// kernel: vanilla_bert_ranker_forward.1
= control target key start
LH: loop header
LB: loop body
LE: loop exit
PB: predicated region body
PF: predicated region fallthrough
CT: control target
= control target key end

     0   :  { %s2677_s29 = smov 0   ;;  %s2679_s30 = smov 0   ;;  %s3283_s0 = inlined_call_operand.vmem [shape: f32[2,32,32], index: 0, kind: input, shape index: {}]   ;;  %s3284_s1 = inlined_call_operand.vmem [shape: f32[2,1,32], index: 1, kind: input, shape index: {}]   ;;  %s3285_s2 = inlined_call_operand.vmem [shape: f32[128,32], index: 2, kind: input, shape index: {}]   ;;  %s3286_s3 = inlined_call_operand.vmem [shape: bf16[12,32,96], index: 3, kind: input, shape index: {}]   ;;  %s3287_s4 = inlined_call_operand.vmem [shape: f32[12,1,96], index: 4, kind: input, shape index: {}]   ;;  %s3288_s5 = inlined_call_operand.vmem [shape: bf16[12,32,32], index: 5, kind: input, shape index: {}]   ;;  %s3289_s6 = inlined_call_operand.vmem [shape: bf16[12,32,64], index: 6, kind: input, shape index: {}]   ;;  %s3290_s7 = inlined_call_operand.vmem [shape: f32[12,1,64], index: 7, kind: input, shape index: {}]   ;;  %s3291_s8 = inlined_call_operand.vmem [shape: bf16[12,64,32], index: 8, kind: input, shape index: {}]   ;;  %s3292_s9 = inlined_call_operand.vmem [shape: f32[12,6,32], index: 9, kind: input, shape index: {}]   ;;  %s3293_s10 = inlined_call_operand.vmem [shape: bf16[32,128], index: 10, kind: input, shape index: {}]   ;;  %s3294_s11 = inlined_call_operand.vmem [shape: bf16[128,128], index: 11, kind: input, shape index: {}]   ;;  %s3295_s12 = inlined_call_operand.vmem [shape: bf16[128,128], index: 12, kind: input, shape index: {}]   ;;  %s3296_s13 = inlined_call_operand.vmem [shape: f32[3,128], index: 13, kind: input, shape index: {}]   ;;  %s3297_s14 = inlined_call_operand.vmem [shape: f32[2,1,128], index: 14, kind: output, shape index: {}]  }
   0x1   :  { %3304 = sst [smem:[#allocation8_spill]] %s3283_s0  ;;  %s2681_s15 = smov 0  }
   0x2   :  { %3305 = sst [smem:[#allocation9_spill]] %s3286_s3  ;;  %s2683_s16 = smov 0  }
   0x3   :  { %3306 = sst [smem:[#allocation10_spill]] %s3293_s10  ;;  %s2685_s17 = smov 0  }
   0x4   :  { %3307 = sst [smem:[#allocation11_spill]] %s3294_s11 }
   0x5   :  { %3308 = sst [smem:[#allocation12_spill]] %s3295_s12 }
   0x6   :  { %3309 = sst [smem:[#allocation13_spill]] %s3296_s13 }
   0x7 LB: > { %3310 = sst [smem:[#allocation3_spill]] %s2588_s15  ;;  %s33_s18 = sadd.s32 1, %s2588_s15  ;;  %s2596_s17 = sphi %s2685_s17, %s24_s17   ;;  %s2592_s16 = sphi %s2683_s16, %s3329_s16   ;;  %s2588_s15 = sphi %s2681_s15, %s3328_s15   ;;  %s2584_s30 = sphi %s2679_s30, %s3327_s30   ;;  %s2580_s29 = sphi %s2677_s29, %s3326_s29  }
   0x8   : > { %3311 = sst [smem:[#allocation4_spill]] %s2592_s16  ;;  %s36_s19 = sadd.s32 1, %s2592_s16 }
   0x9   : > { %3312 = sst [smem:[#allocation5_spill]] %s2596_s17  ;;  %p34_p0 = scmp.ge.s32.totalorder %s33_s18, 12 }
   0xa   : > { %p2136_p1 = scmp.ge.s32.totalorder %s2596_s17, 1  ;;  %p497_p2 = scmp.lt.s32.totalorder %s2596_s17, 25 }
   0xb   : > { %s3331_s18 = smov (%p34_p0, %s33_s18), 0  ;;  %s3333_s19 = smov (!%p34_p0, %s36_s19), %s2592_s16 }
   0xc   : > { %3313 = sst [smem:[#allocation6_spill]] %s3331_s18  ;;  %p498_p3 = pnand %p2136_p1, %p497_p2 }
   0xd   : > { %p38_p4 = scmp.ge.s32.totalorder %s3333_s19, 2  ;;  %p574_p5 = scmp.lt.s32.totalorder (!%p498_p3), %s2584_s30, 1 }
   0xe   : > { %501 = sbr.rel (%p498_p3) target bundleno = 3172 (0xc64), region = 76  ;;  %p582_p6 = scmp.lt.s32.totalorder (!%p498_p3), %s2580_s29, 11 }
   0xf   : > { %s3335_s19 = smov (%p38_p4, %s3333_s19), 0  ;;  %s3315_s0 = sld [smem:[#allocation8_spill]] (!%p498_p3) }
  0x10   : > { %3314 = sst [smem:[#allocation7_spill]] %s3335_s19  ;;  %s3316_s3 = sld [smem:[#allocation9_spill]] (!%p498_p3) }
  0x11   : > { %p2148_p7 = scmp.ne.s32.totalorder (!%p498_p3), %s2580_s29, 0 }
  0x15   : > { %s3337_s30 = smov (!%p574_p5, %s2584_s30), 1  ;;  %vm624_vm0 = vcmask (!%p2148_p7), 261120  }
  0x16   : > { %s2713_s20 = scalar_select %p582_p6, %s2580_s29, 11 }
  0x17   : > { %s2208_s21 = sshll.u32 %s3337_s30, 5  ;;  %619 = sbr.rel (%p2148_p7) target bundleno = 30 (0x1e), region = 80 }
  0x18   : > { %s578_s27 = scalar_lea.vmem %s3315_s0, %s2208_s21  ;;  %s2209_s28 = sshll.u32 %s2713_s20, 4 }
  0x19   : > { %s586_s16 = scalar_lea.vmem %s3316_s3, %s2209_s28  ;;  %s2734_s10 = scalar_lea.vmem %s3288_s5, %s2209_s28  ;;  %v620_v0 = vld [vmem:[%s578_s27] sm:$0xff] (!%p2148_p7)  ;;  %v621_v1 = vld [vmem:[%s578_s27 + $0x8] sm:$0xff] (!%p2148_p7)  ;;  %v622_v2 = vld [vmem:[%s578_s27 + $0x10] sm:$0xff] (!%p2148_p7) }
  0x1a   : > { %s2739_s24 = scalar_lea.vmem %s3289_s6, %s2209_s28  ;;  %s602_s26 = scalar_lea.vmem %s3290_s7, %s2713_s20  ;;  %625 = vst.msk [vmem:[#allocation2] sm:$0xff] (!%p2148_p7), %vm624_vm0, %v620_v0  ;;  %626 = vst.msk [vmem:[#allocation2 + $0x8] sm:$0xff] (!%p2148_p7), %vm624_vm0, %v621_v1  ;;  %v623_v3 = vld [vmem:[%s578_s27 + $0x18] sm:$0xff] (!%p2148_p7) }
  0x1b   : > { %s2212_s18 = sshll.u32 %s2713_s20, 5  ;;  %s2147_s17 = sshll.u32 %s2713_s20, 3  ;;  %627 = vst.msk [vmem:[#allocation2 + $0x10] sm:$0xff] (!%p2148_p7), %vm624_vm0, %v622_v2  ;;  %628 = vst.msk [vmem:[#allocation2 + $0x18] sm:$0xff] (!%p2148_p7), %vm624_vm0, %v623_v3 }
  0x1c   : > { %s2749_s15 = scalar_lea.vmem %s3291_s8, %s2212_s18  ;;  %s2755_s12 = scalar_lea.vmem %s3292_s9, %s2147_s17 }
  0x1d   : > { %s614_s28 = scalar_lea.vmem %s3297_s14, %s3337_s30 }
  0x1e PF: > { %v2442_v4 = vld [vmem:[%s586_s16] sm:$0xff]   ;;  %v2443_v5 = vld [vmem:[%s586_s16 + $0x8] sm:$0xff]   ;;  %vm676_vm1 = vcmask 261120   ;;  %s3317_s13 = scalar_lea.vmem %s3287_s4, %s2713_s20  ;;  %v2784_v13 = vld [vmem:[%s3285_s2 + $0x10] sm:$0xff]  ;;  %s2598_s19 = smov 96   ;;  %vm1572_vm2 = vcmask 523264  }
  0x1f   : > { %2272 = vmatprep.subr.bf16.mxu1 %v2442_v4  ;;  %v2149_v12 = vld [vmem:[%s3317_s13] ss:$0 sm:$0xff]  ;;  %v2789_v15 = vld [vmem:[%s3285_s2 + $0x30] sm:$0xff]  ;;  %v2814_v23 = vld [vmem:[%s3285_s2 + $0x18] sm:$0xff]  ;;  %s3318_s22 = scalar_lea.vmem %s3284_s1, %s3337_s30  ;;  %s2599_s0 = smov 64  }
  0x20   : > { %2273 = vmatpush3.bf16.msra.mxu1 %v2442_v4  ;;  %v2794_v16 = vld [vmem:[%s3285_s2 + $0x50] sm:$0xff]  ;;  %v2799_v19 = vld [vmem:[%s3285_s2] sm:$0xff]  ;;  %v2819_v25 = vld [vmem:[%s3285_s2 + $0x38] sm:$0xff]  ;;  %p2186_p8 = scmp.ne.s32.totalorder %s2580_s29, 11 }
  0x21   : > { %v2762_v6 = vld [vmem:[#allocation2] sm:$0xff]  ;;  %v2764_v7 = vld [vmem:[#allocation2 + $0x8] sm:$0xff]  ;;  %2274 = vmatprep.subr.bf16.mxu1 %v2443_v5  ;;  %v2824_v26 = vld [vmem:[%s3285_s2 + $0x58] sm:$0xff]  ;;  %vm2601_vm3 = vmmov (!%p2186_p8), 0   ;;  %s3321_s27 = sld [smem:[#allocation11_spill]] (!%p2186_p8)  ;;  %s3322_s29 = sld [smem:[#allocation12_spill]] (!%p2186_p8) }
  0x22   : > { %v651_v8 = vpack.c.bf16 %v2764_v7, %v2762_v6  ;;  %v2768_v9 = vld [vmem:[#allocation2 + $0x10] sm:$0xff]  ;;  %v2770_v10 = vld [vmem:[#allocation2 + $0x18] sm:$0xff]  ;;  %v2804_v20 = vld [vmem:[%s3285_s2 + $0x20] sm:$0xff] }
  0x23   : > { %v652_v11 = vpack.c.bf16 %v2770_v10, %v2768_v9  ;;  %v2809_v21 = vld [vmem:[%s3285_s2 + $0x40] sm:$0xff]  ;;  %v2830_v30 = vld [vmem:[%s3285_s2 + $0x8] sm:$0xff]  ;;  %v2870_v49 = vld [vmem:[%s3285_s2 + $0x70] sm:$0xff] }
  0x24   : > { %2276 = vmatprep.mubr.msk.bf16.mxu1 %vm676_vm1, %v651_v8  ;;  %2275 = vmatpush3.bf16.msra.mxu1 %v2443_v5  ;;  %v2835_v31 = vld [vmem:[%s3285_s2 + $0x28] sm:$0xff]  ;;  %v2850_v39 = vld [vmem:[%s3285_s2 + $0x60] sm:$0xff]  ;;  %v2875_v50 = vld [vmem:[%s3285_s2 + $0x78] sm:$0xff] }
  0x25   : > { %v2841_v33 = vld [vmem:[%s3285_s2 + $0x48] sm:$0xff]  ;;  %v2900_v4 = vld [vmem:[%s3318_s22] ss:$0 sm:$0xff] }
  0x26   : > { %v2860_v44 = vld [vmem:[%s3285_s2 + $0x68] sm:$0xff] }
  0x27   : > { %2277 = vmatmul.mubr.msk.bf16.vlgmr.msra.gmra.mrb[0].mxu1 %vm676_vm1, %v652_v11  ;;  %s3323_s23 = smov (!%p2186_p8), %s3322_s29 }
  0xfa   : > { %v2278_v14 = vpop.f32.mrb[0].mxu1 }
  0xfb   : > { %v726_v17 = vadd.f32 %v2278_v14, %v2149_v12  ;;  %v717_v18 = vpop.f32.mrb[1].mxu1 }
  0xfc   : > { %v718_v22 = vadd.f32 %v2149_v12, %v717_v18  ;;  %v2279_v24 = vpop.f32.mrb[2].mxu1 }
  0xfd   : > { %v734_v27 = vmul.f32 %v726_v17, %v2784_v13  ;;  %v729_v28 = vadd.f32 %v2279_v24, %v2149_v12  ;;  %v720_v29 = vpop.f32.mrb[3].mxu1  ;;  %v738_v32 = vmul.f32 %v726_v17, %v2789_v15  ;;  %v742_v34 = vmul.f32 %v726_v17, %v2794_v16 }
  0xfe   : > { %v721_v35 = vadd.f32 %v2149_v12, %v720_v29  ;;  %v732_v36 = vmul.f32 %v718_v22, %v2799_v19  ;;  %v736_v37 = vmul.f32 %v718_v22, %v2804_v20  ;;  %v740_v38 = vmul.f32 %v718_v22, %v2809_v21 }
  0xff   : > { %v735_v40 = vmul.f32 %v729_v28, %v2814_v23  ;;  %v2853_v41 = vpack.c.bf16 %v729_v28, %v726_v17  ;;  %v739_v42 = vmul.f32 %v729_v28, %v2819_v25  ;;  %v743_v43 = vmul.f32 %v729_v28, %v2824_v26 }
 0x100   : > { %v2862_v45 = vpack.c.bf16 %v721_v35, %v718_v22  ;;  %v733_v46 = vmul.f32 %v721_v35, %v2830_v30  ;;  %v737_v47 = vmul.f32 %v721_v35, %v2835_v31  ;;  %v741_v48 = vmul.f32 %v721_v35, %v2841_v33 }
 0x101   : > { %v749_v51 = vpack.c.bf16 %v735_v40, %v734_v27  ;;  %v751_v52 = vpack.c.bf16 %v739_v42, %v738_v32  ;;  %v753_v53 = vpack.c.bf16 %v743_v43, %v742_v34  ;;  %v744_v54 = vmul.f32 %v718_v22, %v2850_v39 }
 0x102   : > { %760 = vrot.lane.b32.xlu0 %v2862_v45, %s2598_s19  ;;  %v748_v55 = vpack.c.bf16 %v733_v46, %v732_v36  ;;  %v750_v56 = vpack.c.bf16 %v737_v47, %v736_v37  ;;  %v752_v57 = vpack.c.bf16 %v741_v48, %v740_v38  ;;  %v745_v58 = vmul.f32 %v721_v35, %v2860_v44 }
 0x103   : > { %v746_v59 = vmul.f32 %v726_v17, %v2870_v49  ;;  %v747_v60 = vmul.f32 %v729_v28, %v2875_v50 }
 0x104   : > { %2284 = vmatprep.mubr.msk.bf16.mxu1 %vm676_vm1, %v748_v55  ;;  %v754_v61 = vpack.c.bf16 %v745_v58, %v744_v54 }
 0x105   : > { %v755_v62 = vpack.c.bf16 %v747_v60, %v746_v59 }
 0x106   : > { %762 = vrot.lane.b32.xlu0 %v2853_v41, %s2598_s19 }
 0x174   : > { %v761_v63 = vpop.permute.xlu0 %760 }
 0x175   : > { %v789_v0 = vsel %vm676_vm1, %v761_v63, 0  ;;  %2396 = vmatprep.subr.msk.bf16.mxu1 %vm676_vm1, %v761_v63 }
 0x176   : > { %2281 = vmatpush3.bf16.xpose.msra.mxu1 %v789_v0 }
 0x178   : > { %v763_v1 = vpop.permute.xlu0 %762 }
 0x179   : > { %2397 = vmatprep.subr.msk.bf16.mxu1 %vm676_vm1, %v763_v1  ;;  %v792_v2 = vsel %vm676_vm1, %v763_v1, 0 }
 0x17e   : > { %2283 = vmatpush3.bf16.xpose.msra.mxu1 %v792_v2 }
 0x185   : > { %2285 = vmatmul.mubr.msk.bf16.vlgmr.msra.gmra.mrb[4].mxu1 %vm676_vm1, %v749_v51 }
 0x186   : > { %2288 = vmatprep.mubr.msk.bf16.mxu1 %vm676_vm1, %v750_v56 }
 0x18d   : > { %2289 = vmatmul.mubr.msk.bf16.gmra.mrb[8].mxu1 %vm676_vm1, %v751_v52 }
 0x18e   : > { %2292 = vmatprep.mubr.msk.bf16.mxu1 %vm676_vm1, %v752_v57 }
 0x195   : > { %2293 = vmatmul.mubr.msk.bf16.gmra.mrb[12].mxu1 %vm676_vm1, %v753_v53 }
 0x196   : > { %2296 = vmatprep.mubr.msk.bf16.mxu1 %vm676_vm1, %v754_v61 }
 0x19d   : > { %2297 = vmatmul.mubr.msk.bf16.gmra.mrb[16].mxu1 %vm676_vm1, %v755_v62 }
 0x258   : > { %v2286_v3 = vpop.f32.mrb[4].mxu1 }
 0x259   : > { %v893_v5 = vmul.f32 0.35355338, %v2286_v3  ;;  %v828_v8 = vpop.f32.mrb[5].mxu1 }
 0x25a   : > { %v891_v11 = vmul.f32 0.35355338, %v828_v8  ;;  %v2287_v12 = vpop.f32.mrb[6].mxu1 }
 0x25b   : > { %v894_v14 = vmul.f32 0.35355338, %v2287_v12  ;;  %v831_v17 = vpop.f32.mrb[7].mxu1  ;;  %v2903_v18 = vadd.f32 %v2900_v4, %v893_v5 }
 0x25c   : > { %v2906_v22 = vadd.f32 %v2900_v4, %v891_v11  ;;  %v892_v27 = vmul.f32 0.35355338, %v831_v17 }
 0x25d   : > { %v935_v24 = vsel %vm676_vm1, %v2903_v18, -inf  ;;  %v2913_v29 = vadd.f32 %v2900_v4, %v894_v14 }
 0x25e   : > { %936 = vmax.xlane.f32.xlu0 %v935_v24  ;;  %v929_v28 = vsel %vm676_vm1, %v2906_v22, -inf  ;;  %v2918_v38 = vadd.f32 %v2900_v4, %v892_v27 }
 0x25f   : > { %930 = vmax.xlane.f32.xlu1 %v929_v28  ;;  %v938_v37 = vsel %vm676_vm1, %v2913_v29, -inf }
 0x260   : > { %v2290_v32 = vpop.f32.mrb[8].mxu1  ;;  %v932_v43 = vsel %vm676_vm1, %v2918_v38, -inf }
 0x261   : > { %v844_v34 = vpop.f32.mrb[9].mxu1  ;;  %v897_v35 = vmul.f32 0.35355338, %v2290_v32 }
 0x262   : > { %v2291_v36 = vpop.f32.mrb[10].mxu1  ;;  %v895_v42 = vmul.f32 0.35355338, %v844_v34 }
 0x263   : > { %939 = vmax.xlane.f32.xlu1 %v938_v37  ;;  %v847_v40 = vpop.f32.mrb[11].mxu1  ;;  %v2923_v46 = vadd.f32 %v2900_v4, %v897_v35  ;;  %v898_v51 = vmul.f32 0.35355338, %v2291_v36 }
 0x264   : > { %v2928_v54 = vadd.f32 %v2900_v4, %v895_v42  ;;  %v896_v58 = vmul.f32 0.35355338, %v847_v40 }
 0x265   : > { %v947_v53 = vsel %vm676_vm1, %v2923_v46, -inf  ;;  %v2936_v60 = vadd.f32 %v2900_v4, %v898_v51 }
 0x266   : > { %v941_v59 = vsel %vm676_vm1, %v2928_v54, -inf  ;;  %v2943_v3 = vadd.f32 %v2900_v4, %v896_v58 }
 0x267   : > { %933 = vmax.xlane.f32.xlu1 %v932_v43  ;;  %v950_v2 = vsel %vm676_vm1, %v2936_v60, -inf }
 0x268   : > { %v2294_v47 = vpop.f32.mrb[12].mxu1  ;;  %v944_v14 = vsel %vm676_vm1, %v2943_v3, -inf }
 0x269   : > { %v860_v48 = vpop.f32.mrb[13].mxu1  ;;  %v901_v0 = vmul.f32 0.35355338, %v2294_v47 }
 0x26a   : > { %v2295_v52 = vpop.f32.mrb[14].mxu1  ;;  %v899_v12 = vmul.f32 0.35355338, %v860_v48 }
 0x26b   : > { %v902_v55 = vmul.f32 0.35355338, %v2295_v52  ;;  %948 = vmax.xlane.f32.xlu1 %v947_v53  ;;  %v863_v56 = vpop.f32.mrb[15].mxu1  ;;  %v2951_v24 = vadd.f32 %v2900_v4, %v901_v0 }
 0x26c   : > { %v900_v32 = vmul.f32 0.35355338, %v863_v56  ;;  %v2961_v35 = vadd.f32 %v2900_v4, %v899_v12 }
 0x26d   : > { %v2931_v57 = vadd.f32 %v2900_v4, %v902_v55  ;;  %v959_v34 = vsel %vm676_vm1, %v2951_v24, -inf }
 0x26e   : > { %v953_v40 = vsel %vm676_vm1, %v2961_v35, -inf  ;;  %v2968_v42 = vadd.f32 %v2900_v4, %v900_v32 }
 0x26f   : > { %942 = vmax.xlane.f32.xlu1 %v941_v59  ;;  %v962_v61 = vsel %vm676_vm1, %v2931_v57, -inf }
 0x270   : > { %963 = vmax.xlane.f32.xlu0 %v962_v61  ;;  %v2298_v62 = vpop.f32.mrb[16].mxu1  ;;  %v956_v47 = vsel %vm676_vm1, %v2968_v42, -inf }
 0x271   : > { %v876_v63 = vpop.f32.mrb[17].mxu1  ;;  %v905_v37 = vmul.f32 0.35355338, %v2298_v62 }
 0x272   : > { %v2299_v1 = vpop.f32.mrb[18].mxu1  ;;  %v903_v43 = vmul.f32 0.35355338, %v876_v63 }
 0x273   : > { %951 = vmax.xlane.f32.xlu1 %v950_v2  ;;  %v879_v5 = vpop.f32.mrb[19].mxu1  ;;  %v906_v8 = vmul.f32 0.35355338, %v2299_v1  ;;  %v2973_v48 = vadd.f32 %v2900_v4, %v905_v37 }
 0x274   : > { %v904_v11 = vmul.f32 0.35355338, %v879_v5  ;;  %v2978_v52 = vadd.f32 %v2900_v4, %v903_v43 }
 0x275   : > { %v2956_v28 = vadd.f32 %v2900_v4, %v906_v8  ;;  %v971_v51 = vsel %vm676_vm1, %v2973_v48, -inf }
 0x276   : > { %v2948_v17 = vadd.f32 %v2900_v4, %v904_v11  ;;  %v965_v53 = vsel %vm676_vm1, %v2978_v52, -inf }
 0x277   : > { %945 = vmax.xlane.f32.xlu1 %v944_v14  ;;  %v974_v36 = vsel %vm676_vm1, %v2956_v28, -inf }
 0x278   : > { %v968_v27 = vsel %vm676_vm1, %v2948_v17, -inf }
 0x279   : > { %969 = vmax.xlane.f32.xlu0 %v968_v27 }
 0x27b   : > { %960 = vmax.xlane.f32.xlu1 %v959_v34 }
 0x27d   : > { %975 = vmax.xlane.f32.xlu0 %v974_v36 }
 0x27f   : > { %954 = vmax.xlane.f32.xlu1 %v953_v40 }
 0x283   : > { %957 = vmax.xlane.f32.xlu1 %v956_v47 }
 0x287   : > { %972 = vmax.xlane.f32.xlu1 %v971_v51 }
 0x28b   : > { %966 = vmax.xlane.f32.xlu1 %v965_v53 }
 0x29c   : > { %1113 = vrot.lane.b32.xlu1 %v2862_v45, %s2599_s0 }
 0x2eb   : > { %v937_v55 = vpop.xlane.xlu0 %936 }
 0x2ec   : > { %v979_v56 = vsub.f32 %v2903_v18, %v937_v55  ;;  %v931_v58 = vpop.xlane.xlu1 %930 }
 0x2ed   : > { %v977_v59 = vsub.f32 %v2906_v22, %v931_v58 }
 0x2ee   : > { %v997_v61 = vmul.f32 1.442695, %v979_v56 }
 0x2ef   : > { %v993_v62 = vmul.f32 1.442695, %v977_v59 }
 0x2f0   : > { %2452 = vpow2.f32 %v997_v61  ;;  %v940_v4 = vpop.xlane.xlu1 %939 }
 0x2f1   : > { %v980_v63 = vsub.f32 %v2913_v29, %v940_v4  ;;  %2454 = vpow2.f32 %v993_v62 }
 0x2f3   : > { %v999_v0 = vmul.f32 1.442695, %v980_v63 }
 0x2f4   : > { %v934_v1 = vpop.xlane.xlu1 %933 }
 0x2f5   : > { %2456 = vpow2.f32 %v999_v0  ;;  %v978_v2 = vsub.f32 %v2918_v38, %v934_v1 }
 0x2f7   : > { %v995_v5 = vmul.f32 1.442695, %v978_v2 }
 0x2f8   : > { %v949_v45 = vpop.xlane.xlu1 %948 }
 0x2f9   : > { %2458 = vpow2.f32 %v995_v5  ;;  %v983_v18 = vsub.f32 %v2923_v46, %v949_v45 }
 0x2fa   : > { %v2989_v8 = vpop.eup %2452 }
 0x2fb   : > { %v1005_v22 = vmul.f32 1.442695, %v983_v18  ;;  %v1031_v11 = vsel %vm676_vm1, %v2989_v8, 0.0  ;;  %v2993_v12 = vpop.eup %2454 }
 0x2fc   : > { %v943_v29 = vpop.xlane.xlu1 %942  ;;  %1032 = vadd.xlane.f32.xlu1 %v1031_v11  ;;  %v1025_v32 = vsel %vm676_vm1, %v2993_v12, 0.0 }
 0x2fd   : > { %2460 = vpow2.f32 %v1005_v22  ;;  %v981_v14 = vsub.f32 %v2928_v54, %v943_v29  ;;  %v964_v46 = vpop.xlane.xlu0 %963 }
 0x2fe   : > { %v988_v54 = vsub.f32 %v2931_v57, %v964_v46 }
 0x2ff   : > { %v2996_v27 = vpop.eup %2456  ;;  %v1001_v38 = vmul.f32 1.442695, %v981_v14 }
 0x300   : > { %v952_v34 = vpop.xlane.xlu1 %951  ;;  %1026 = vadd.xlane.f32.xlu1 %v1025_v32  ;;  %v1034_v36 = vsel %vm676_vm1, %v2996_v27, 0.0  ;;  %v1015_v56 = vmul.f32 1.442695, %v988_v54 }
 0x301   : > { %2462 = vpow2.f32 %v1001_v38  ;;  %v984_v37 = vsub.f32 %v2936_v60, %v952_v34  ;;  %1035 = vadd.xlane.f32.xlu0 %v1034_v36 }
 0x303   : > { %v3003_v40 = vpop.eup %2458  ;;  %v1007_v43 = vmul.f32 1.442695, %v984_v37 }
 0x304   : > { %v946_v47 = vpop.xlane.xlu1 %945  ;;  %v1028_v51 = vsel %vm676_vm1, %v3003_v40, 0.0 }
 0x305   : > { %2464 = vpow2.f32 %v1007_v43  ;;  %v982_v53 = vsub.f32 %v2943_v3, %v946_v47  ;;  %1029 = vadd.xlane.f32.xlu0 %v1028_v51 }
 0x306   : > { %v970_v45 = vpop.xlane.xlu0 %969 }
 0x307   : > { %v3009_v55 = vpop.eup %2460  ;;  %v1003_v58 = vmul.f32 1.442695, %v982_v53  ;;  %v990_v32 = vsub.f32 %v2948_v17, %v970_v45 }
 0x308   : > { %v961_v59 = vpop.xlane.xlu1 %960  ;;  %v1043_v60 = vsel %vm676_vm1, %v3009_v55, 0.0 }
 0x309   : > { %2466 = vpow2.f32 %v1003_v58  ;;  %v987_v57 = vsub.f32 %v2951_v24, %v961_v59  ;;  %1044 = vadd.xlane.f32.xlu1 %v1043_v60  ;;  %v1019_v43 = vmul.f32 1.442695, %v990_v32 }
 0x30a   : > { %2468 = vpow2.f32 %v1015_v56  ;;  %v976_v46 = vpop.xlane.xlu0 %975 }
 0x30b   : > { %v3014_v61 = vpop.eup %2462  ;;  %v1013_v62 = vmul.f32 1.442695, %v987_v57  ;;  %v992_v47 = vsub.f32 %v2956_v28, %v976_v46 }
 0x30c   : > { %v955_v4 = vpop.xlane.xlu1 %954  ;;  %v1037_v3 = vsel %vm676_vm1, %v3014_v61, 0.0 }
 0x30d   : > { %2470 = vpow2.f32 %v1013_v62  ;;  %v985_v63 = vsub.f32 %v2961_v35, %v955_v4  ;;  %1038 = vadd.xlane.f32.xlu1 %v1037_v3 }
 0x30f   : > { %v3019_v0 = vpop.eup %2464  ;;  %v1009_v1 = vmul.f32 1.442695, %v985_v63 }
 0x310   : > { %v958_v2 = vpop.xlane.xlu1 %957  ;;  %v1046_v24 = vsel %vm676_vm1, %v3019_v0, 0.0 }
 0x311   : > { %2472 = vpow2.f32 %v1009_v1  ;;  %v986_v5 = vsub.f32 %v2968_v42, %v958_v2  ;;  %1047 = vadd.xlane.f32.xlu0 %v1046_v24 }
 0x313   : > { %v3024_v18 = vpop.eup %2466  ;;  %v1011_v22 = vmul.f32 1.442695, %v986_v5 }
 0x314   : > { %v973_v11 = vpop.xlane.xlu1 %972  ;;  %v1040_v35 = vsel %vm676_vm1, %v3024_v18, 0.0  ;;  %v3028_v29 = vpop.eup %2468 }
 0x315   : > { %2474 = vpow2.f32 %v1011_v22  ;;  %v991_v14 = vsub.f32 %v2973_v48, %v973_v11  ;;  %1041 = vadd.xlane.f32.xlu0 %v1040_v35  ;;  %v1058_v37 = vsel %vm676_vm1, %v3028_v29, 0.0 }
 0x317   : > { %v3031_v38 = vpop.eup %2470  ;;  %v1021_v42 = vmul.f32 1.442695, %v991_v14 }
 0x318   : > { %v967_v34 = vpop.xlane.xlu1 %966  ;;  %v1055_v36 = vsel %vm676_vm1, %v3031_v38, 0.0 }
 0x319   : > { %2476 = vpow2.f32 %v1021_v42  ;;  %v989_v54 = vsub.f32 %v2978_v52, %v967_v34  ;;  %1056 = vadd.xlane.f32.xlu1 %v1055_v36  ;;  %1059 = vadd.xlane.f32.xlu0 %v1058_v37  ;;  %v1023_v52 = vmul.f32 1.442695, %v992_v47 }
 0x31b   : > { %v3039_v48 = vpop.eup %2472  ;;  %v1017_v17 = vmul.f32 1.442695, %v989_v54 }
 0x31c   : > { %v1114_v51 = vpop.permute.xlu1 %1113  ;;  %v1049_v53 = vsel %vm676_vm1, %v3039_v48, 0.0 }
 0x31d   : > { %2478 = vpow2.f32 %v1017_v17  ;;  %1050 = vadd.xlane.f32.xlu1 %v1049_v53  ;;  %2300 = vmatprep.subr.bf16.mxu0 %v1114_v51 }
 0x31e   : > { %2301 = vmatpush3.bf16.msra.mxu0 %v1114_v51  ;;  %2480 = vpow2.f32 %v1019_v43 }
 0x31f   : > { %v3044_v56 = vpop.eup %2474  ;;  %2482 = vpow2.f32 %v1023_v52 }
 0x320   : > { %v1052_v58 = vsel %vm676_vm1, %v3044_v56, 0.0 }
 0x321   : > { %1053 = vadd.xlane.f32.xlu0 %v1052_v58 }
 0x323   : > { %v3048_v59 = vpop.eup %2476 }
 0x324   : > { %v1067_v28 = vsel %vm676_vm1, %v3048_v59, 0.0 }
 0x325   : > { %1068 = vadd.xlane.f32.xlu0 %v1067_v28 }
 0x327   : > { %v3052_v60 = vpop.eup %2478 }
 0x328   : > { %v1061_v57 = vsel %vm676_vm1, %v3052_v60, 0.0  ;;  %v3056_v62 = vpop.eup %2480 }
 0x329   : > { %1062 = vadd.xlane.f32.xlu0 %v1061_v57  ;;  %v1064_v4 = vsel %vm676_vm1, %v3056_v62, 0.0  ;;  %v3060_v3 = vpop.eup %2482 }
 0x32a   : > { %v1070_v63 = vsel %vm676_vm1, %v3060_v3, 0.0 }
 0x32d   : > { %1065 = vadd.xlane.f32.xlu0 %v1064_v4 }
 0x32e   : > { %1115 = vrot.lane.b32.xlu1 %v2853_v41, %s2599_s0 }
 0x331   : > { %1071 = vadd.xlane.f32.xlu0 %v1070_v63 }
 0x389   : > { %v1033_v1 = vpop.xlane.xlu1 %1032 }
 0x38d   : > { %v1027_v2 = vpop.xlane.xlu1 %1026 }
 0x38e   : > { %v1036_v24 = vpop.xlane.xlu0 %1035  ;;  %2484 = vrcp.f32 %v1027_v2 }
 0x392   : > { %v1030_v5 = vpop.xlane.xlu0 %1029 }
 0x393   : > { %2486 = vrcp.f32 %v1030_v5 }
 0x394   : > { %2488 = vrcp.f32 %v1036_v24 }
 0x395   : > { %2490 = vrcp.f32 %v1033_v1 }
 0x396   : > { %v1045_v45 = vpop.xlane.xlu1 %1044 }
 0x398   : > { %v2485_v22 = vpop.eup %2484 }
 0x399   : > { %v1089_v14 = vmul.f32 %v2485_v22, %v2993_v12 }
 0x39a   : > { %v1039_v42 = vpop.xlane.xlu1 %1038 }
 0x39b   : > { %2492 = vrcp.f32 %v1039_v42 }
 0x39d   : > { %v2487_v11 = vpop.eup %2486 }
 0x39e   : > { %v1048_v35 = vpop.xlane.xlu0 %1047  ;;  %v1090_v32 = vmul.f32 %v2487_v11, %v3003_v40  ;;  %v2489_v36 = vpop.eup %2488 }
 0x39f   : > { %v2491_v43 = vpop.eup %2490  ;;  %v1092_v40 = vmul.f32 %v2489_v36, %v2996_v27 }
 0x3a0   : > { %v1105_v41 = vpack.c.bf16 %v1090_v32, %v1089_v14  ;;  %v1091_v52 = vmul.f32 %v2491_v43, %v2989_v8  ;;  %v2444_v43 = vld [vmem:[%s2734_s10] sm:$0xff]  }
 0x3a2   : > { %2304 = vmatprep.mubr.msk.bf16.mxu0 %vm676_vm1, %v1105_v41  ;;  %v1042_v46 = vpop.xlane.xlu0 %1041  ;;  %v1106_v28 = vpack.c.bf16 %v1092_v40, %v1091_v52 }
 0x3a3   : > { %2494 = vrcp.f32 %v1042_v46 }
 0x3a4   : > { %2496 = vrcp.f32 %v1048_v35 }
 0x3a5   : > { %2498 = vrcp.f32 %v1045_v45  ;;  %v2493_v47 = vpop.eup %2492 }
 0x3a6   : > { %v1057_v34 = vpop.xlane.xlu1 %1056  ;;  %v1060_v37 = vpop.xlane.xlu0 %1059  ;;  %v1093_v58 = vmul.f32 %v2493_v47, %v3014_v61  ;;  %v2445_v47 = vld [vmem:[%s2734_s10 + $0x8] sm:$0xff]  }
 0x3aa   : > { %v1051_v54 = vpop.xlane.xlu1 %1050 }
 0x3ab   : > { %2500 = vrcp.f32 %v1051_v54 }
 0x3ac   : > { %2502 = vrcp.f32 %v1057_v34 }
 0x3ad   : > { %v2495_v12 = vpop.eup %2494 }
 0x3ae   : > { %v1116_v17 = vpop.permute.xlu1 %1115  ;;  %v1054_v51 = vpop.xlane.xlu0 %1053  ;;  %v1094_v53 = vmul.f32 %v2495_v12, %v3024_v18 }
 0x3af   : > { %2504 = vrcp.f32 %v1054_v51  ;;  %2302 = vmatprep.subr.bf16.mxu0 %v1116_v17  ;;  %v2497_v57 = vpop.eup %2496 }
 0x3b0   : > { %2506 = vrcp.f32 %v1060_v37  ;;  %2303 = vmatpush3.bf16.msra.mxu0 %v1116_v17  ;;  %v1107_v63 = vpack.c.bf16 %v1094_v53, %v1093_v58  ;;  %v2499_v27 = vpop.eup %2498  ;;  %v1096_v1 = vmul.f32 %v2497_v57, %v3019_v0 }
 0x3b1   : > { %v1095_v24 = vmul.f32 %v2499_v27, %v3009_v55  ;;  %2320 = vmatprep.subr.bf16.mxu0 %v2444_v43 }
 0x3b2   : > { %v1069_v4 = vpop.xlane.xlu0 %1068 }
 0x3b3   : > { %2305 = vmatmul.mubr.msk.bf16.vlgmr.msra.gmra.mrb[0].mxu0 %vm676_vm1, %v1106_v28  ;;  %v1108_v45 = vpack.c.bf16 %v1096_v1, %v1095_v24 }
 0x3b4   : > { %2308 = vmatprep.mubr.msk.bf16.mxu0 %vm676_vm1, %v1107_v63  ;;  %2321 = vmatpush3.bf16.msra.mxu0 %v2444_v43 }
 0x3b5   : > { %v2501_v2 = vpop.eup %2500  ;;  %2322 = vmatprep.subr.bf16.mxu0 %v2445_v47 }
 0x3b6   : > { %v1063_v18 = vpop.xlane.xlu0 %1062  ;;  %v2503_v8 = vpop.eup %2502  ;;  %v1097_v11 = vmul.f32 %v2501_v2, %v3039_v48 }
 0x3b7   : > { %2508 = vrcp.f32 %v1063_v18  ;;  %v1099_v0 = vmul.f32 %v2503_v8, %v3031_v38 }
 0x3b8   : > { %2323 = vmatpush3.bf16.msra.mxu0 %v2445_v47 }
 0x3b9   : > { %v2505_v5 = vpop.eup %2504 }
 0x3ba   : > { %v2507_v61 = vpop.eup %2506  ;;  %v1066_v22 = vpop.xlane.xlu0 %1065  ;;  %v1098_v35 = vmul.f32 %v2505_v5, %v3044_v56 }
 0x3bb   : > { %2510 = vrcp.f32 %v1066_v22  ;;  %2309 = vmatmul.mubr.msk.bf16.gmra.mrb[4].mxu0 %vm676_vm1, %v1108_v45  ;;  %v1100_v32 = vmul.f32 %v2507_v61, %v3028_v29 }
 0x3bc   : > { %v1109_v14 = vpack.c.bf16 %v1098_v35, %v1097_v11  ;;  %2512 = vrcp.f32 %v1069_v4 }
 0x3bd   : > { %v1110_v42 = vpack.c.bf16 %v1100_v32, %v1099_v0 }
 0x3be   : > { %2312 = vmatprep.mubr.msk.bf16.mxu0 %vm676_vm1, %v1109_v14  ;;  %v1072_v55 = vpop.xlane.xlu0 %1071 }
 0x3bf   : > { %2514 = vrcp.f32 %v1072_v55 }
 0x3c1   : > { %v2509_v41 = vpop.eup %2508 }
 0x3c2   : > { %v1101_v56 = vmul.f32 %v2509_v41, %v3052_v60 }
 0x3c3   : > { %2313 = vmatmul.mubr.msk.bf16.gmra.mrb[8].mxu0 %vm676_vm1, %v1110_v42 }
 0x3c5   : > { %v2511_v48 = vpop.eup %2510 }
 0x3c6   : > { %v1102_v46 = vmul.f32 %v2511_v48, %v3056_v62  ;;  %v2513_v34 = vpop.eup %2512 }
 0x3c7   : > { %v1103_v29 = vmul.f32 %v2513_v34, %v3048_v59 }
 0x3c8   : > { %v1111_v36 = vpack.c.bf16 %v1102_v46, %v1101_v56  ;;  %v3114_v46 = vld [vmem:[%s2755_s12] sm:$0x3f] }
 0x3c9   : > { %v2515_v38 = vpop.eup %2514 }
 0x3ca   : > { %2316 = vmatprep.mubr.msk.bf16.mxu0 %vm676_vm1, %v1111_v36  ;;  %v1104_v37 = vmul.f32 %v2515_v38, %v3060_v3 }
 0x3cc   : > { %v1112_v54 = vpack.c.bf16 %v1104_v37, %v1103_v29 }
 0x3ce   : > { %2317 = vmatmul.mubr.msk.bf16.gmra.mrb[12].mxu0 %vm676_vm1, %v1112_v54 }
 0x486   : > { %v2306_v60 = vpop.f32.mrb[0].mxu0 }
 0x487   : > { %v1177_v62 = vpop.f32.mrb[1].mxu0  ;;  %v1242_v51 = vmul.f32 %v2306_v60, %v2784_v13 }
 0x488   : > { %v2307_v12 = vpop.f32.mrb[2].mxu0  ;;  %v1240_v3 = vmul.f32 %v1177_v62, %v2799_v19 }
 0x489   : > { %v1180_v40 = vpop.f32.mrb[3].mxu0  ;;  %v1243_v28 = vmul.f32 %v2307_v12, %v2814_v23 }
 0x48a   : > { %v1241_v27 = vmul.f32 %v1180_v40, %v2830_v30 }
 0x48e   : > { %v2310_v17 = vpop.f32.mrb[4].mxu0 }
 0x48f   : > { %v1246_v59 = vmul.f32 %v2310_v17, %v2789_v15  ;;  %v1193_v53 = vpop.f32.mrb[5].mxu0 }
 0x490   : > { %v1244_v52 = vmul.f32 %v1193_v53, %v2804_v20  ;;  %v2311_v58 = vpop.f32.mrb[6].mxu0 }
 0x491   : > { %v1258_v57 = vadd.f32 %v1246_v59, %v1242_v51  ;;  %v1247_v4 = vmul.f32 %v2311_v58, %v2819_v25  ;;  %v1196_v63 = vpop.f32.mrb[7].mxu0 }
 0x492   : > { %v1256_v1 = vadd.f32 %v1244_v52, %v1240_v3  ;;  %v1245_v18 = vmul.f32 %v1196_v63, %v2835_v31 }
 0x493   : > { %v1259_v13 = vadd.f32 %v1247_v4, %v1243_v28 }
 0x494   : > { %v1257_v2 = vadd.f32 %v1245_v18, %v1241_v27 }
 0x496   : > { %v2314_v15 = vpop.f32.mrb[8].mxu0 }
 0x497   : > { %v1250_v24 = vmul.f32 %v2314_v15, %v2794_v16  ;;  %v1209_v19 = vpop.f32.mrb[9].mxu0 }
 0x498   : > { %v1248_v20 = vmul.f32 %v1209_v19, %v2809_v21  ;;  %v2315_v8 = vpop.f32.mrb[10].mxu0 }
 0x499   : > { %v1262_v5 = vadd.f32 %v1258_v57, %v1250_v24  ;;  %v1251_v23 = vmul.f32 %v2315_v8, %v2824_v26  ;;  %v1212_v45 = vpop.f32.mrb[11].mxu0  ;;  %v2447_v8 = vld [vmem:[%s2739_s24 + $0x8] sm:$0xff]  }
 0x49a   : > { %v1260_v25 = vadd.f32 %v1256_v1, %v1248_v20  ;;  %v1249_v61 = vmul.f32 %v1212_v45, %v2841_v33  ;;  %v2446_v20 = vld [vmem:[%s2739_s24] sm:$0xff]  }
 0x49b   : > { %v1263_v30 = vadd.f32 %v1259_v13, %v1251_v23  ;;  %2328 = vmatprep.subr.bf16.mxu1 %v2446_v20 }
 0x49c   : > { %v1261_v22 = vadd.f32 %v1257_v2, %v1249_v61  ;;  %2329 = vmatpush3.bf16.msra.mxu1 %v2446_v20 }
 0x49d   : > { %2330 = vmatprep.subr.bf16.mxu1 %v2447_v8 }
 0x4a0   : > { %2331 = vmatpush3.bf16.msra.mxu1 %v2447_v8 }
 0x4a1   : > { %v2318_v11 = vpop.f32.mrb[12].mxu0 }
 0x4a2   : > { %v1254_v31 = vmul.f32 %v2318_v11, %v2870_v49  ;;  %v1225_v35 = vpop.f32.mrb[13].mxu0  ;;  %v1274_v49 = vlaneseq }
 0x4a3   : > { %v1252_v14 = vmul.f32 %v1225_v35, %v2850_v39  ;;  %v2319_v16 = vpop.f32.mrb[14].mxu0 }
 0x4a4   : > { %v1266_v0 = vadd.f32 %v1262_v5, %v1254_v31  ;;  %v1255_v21 = vmul.f32 %v2319_v16, %v2875_v50  ;;  %v1228_v32 = vpop.f32.mrb[15].mxu0  ;;  %v3110_v56 = vshrl.u32 %v1274_v49, 7 }
 0x4a5   : > { %v1264_v55 = vadd.f32 %v1260_v25, %v1252_v14  ;;  %v1253_v26 = vmul.f32 %v1228_v32, %v2860_v44 }
 0x4a6   : > { %v1267_v42 = vadd.f32 %v1263_v30, %v1255_v21  ;;  %v1276_v39 = vsub.s32 0, %v3110_v56 }
 0x4a7   : > { %v1265_v41 = vadd.f32 %v1261_v22, %v1253_v26 }
 0x4a8   : > { %v1269_v33 = vpack.c.bf16 %v1267_v42, %v1266_v0  ;;  %v1277_v50 = vrot.slane %v3114_v46, %v1276_v39  ;;  %v1404_v0 = vsub.s32 1, %v3110_v56  ;;  %v1412_v42 = vsub.s32 2, %v3110_v56 }
 0x4a9   : > { %v1268_v48 = vpack.c.bf16 %v1265_v41, %v1264_v55 }
 0x4aa   : > { %v1405_v26 = vrot.slane %v3114_v46, %v1404_v0  ;;  %v1413_v39 = vrot.slane %v3114_v46, %v1412_v42 }
 0x4ab   : > { %2324 = vmatprep.mubr.msk.bf16.mxu0 %vm676_vm1, %v1268_v48 }
 0x4ac   : > { %2325 = vmatmul.mubr.msk.bf16.vlgmr.msra.gmra.mrb[16].mxu0 %vm676_vm1, %v1269_v33 }
 0x57f   : > { %v2326_v34 = vpop.f32.mrb[16].mxu0 }
 0x580   : > { %v1330_v36 = vpop.f32.mrb[17].mxu0  ;;  %v1339_v44 = vadd.f32 %v2326_v34, %v1277_v50 }
 0x581   : > { %v1331_v38 = vadd.f32 %v1330_v36, %v1277_v50  ;;  %v2327_v29 = vpop.f32.mrb[18].mxu0 }
 0x582   : > { %v1333_v37 = vpop.f32.mrb[19].mxu0  ;;  %v1342_v47 = vadd.f32 %v2327_v29, %v1277_v50  ;;  %v1347_v12 = vadd.f32 %v1339_v44, %v2768_v9 }
 0x583   : > { %v1334_v54 = vadd.f32 %v1333_v37, %v1277_v50  ;;  %v1345_v43 = vadd.f32 %v1331_v38, %v2762_v6 }
 0x584   : > { %v1355_v17 = vsel %vm676_vm1, %v1347_v12, 0.0  ;;  %v1348_v51 = vadd.f32 %v1342_v47, %v2770_v10 }
 0x585   : > { %v1349_v60 = vsel %vm676_vm1, %v1345_v43, 0.0  ;;  %v1346_v62 = vadd.f32 %v1334_v54, %v2764_v7 }
 0x586   : > { %1350 = vadd.xlane.f32.xlu0 %v1349_v60  ;;  %v1358_v59 = vsel %vm676_vm1, %v1348_v51, 0.0 }
 0x587   : > { %v1352_v40 = vsel %vm676_vm1, %v1346_v62, 0.0 }
 0x588   : > { %1353 = vadd.xlane.f32.xlu1 %v1352_v40  ;;  %v2450_v40 = vld [vmem:[%s2749_s15 + $0x10] sm:$0xff]  }
 0x58a   : > { %1356 = vadd.xlane.f32.xlu0 %v1355_v17  ;;  %v2451_v17 = vld [vmem:[%s2749_s15 + $0x18] sm:$0xff]  }
 0x58e   : > { %1359 = vadd.xlane.f32.xlu0 %v1358_v59 }
 0x613   : > { %v1351_v6 = vpop.xlane.xlu0 %1350 }
 0x614   : > { %v1362_v53 = vmul.f32 0.03125, %v1351_v6 }
 0x615   : > { %v1354_v3 = vpop.xlane.xlu1 %1353 }
 0x616   : > { %v1366_v7 = vsub.f32 %v1345_v43, %v1362_v53  ;;  %v1363_v28 = vmul.f32 0.03125, %v1354_v3 }
 0x617   : > { %v1357_v52 = vpop.xlane.xlu0 %1356 }
 0x618   : > { %v1364_v58 = vmul.f32 0.03125, %v1357_v52  ;;  %v1367_v63 = vsub.f32 %v1346_v62, %v1363_v28  ;;  %v1370_v1 = vmul.f32 %v1366_v7, %v1366_v7  ;;  %v2448_v62 = vld [vmem:[%s2749_s15] sm:$0xff]  }
 0x619   : > { %2336 = vmatprep.subr.bf16.mxu0 %v2448_v62 }
 0x61a   : > { %v1368_v9 = vsub.f32 %v1347_v12, %v1364_v58  ;;  %v1374_v13 = vsel %vm676_vm1, %v1370_v1, 0.0  ;;  %v1371_v2 = vmul.f32 %v1367_v63, %v1367_v63  ;;  %v2449_v12 = vld [vmem:[%s2749_s15 + $0x8] sm:$0xff]   ;;  %2337 = vmatpush3.bf16.msra.mxu0 %v2448_v62  ;;  %s3319_s15 = sld [smem:[#allocation10_spill]] (!%p2186_p8) }
 0x61b   : > { %v1360_v57 = vpop.xlane.xlu0 %1359  ;;  %2338 = vmatprep.subr.bf16.mxu0 %v2449_v12 }
 0x61c   : > { %v1372_v4 = vmul.f32 %v1368_v9, %v1368_v9  ;;  %v1365_v27 = vmul.f32 0.03125, %v1360_v57  ;;  %v1377_v15 = vsel %vm676_vm1, %v1371_v2, 0.0 }
 0x61e   : > { %v1380_v10 = vsel %vm676_vm1, %v1372_v4, 0.0  ;;  %v1369_v18 = vsub.f32 %v1348_v51, %v1365_v27  ;;  %2339 = vmatpush3.bf16.msra.mxu0 %v2449_v12  ;;  %v2175_v51 = vld [vmem:[%s602_s26] ss:$0 sm:$0xff]  ;;  %s3324_s26 = sld [smem:[#allocation13_spill]] (!%p2186_p8) }
 0x61f   : > { %1381 = vadd.xlane.f32.xlu0 %v1380_v10  ;;  %2340 = vmatprep.subr.bf16.mxu0 %v2450_v40 }
 0x620   : > { %v1373_v24 = vmul.f32 %v1369_v18, %v1369_v18  ;;  %s3320_s12 = smov (!%p2186_p8), %s3319_s15 }
 0x622   : > { %v1383_v19 = vsel %vm676_vm1, %v1373_v24, 0.0  ;;  %2341 = vmatpush3.bf16.msra.mxu0 %v2450_v40 }
 0x623   : > { %1375 = vadd.xlane.f32.xlu0 %v1374_v13  ;;  %2342 = vmatprep.subr.bf16.mxu0 %v2451_v17 }
 0x626   : > { %2343 = vmatpush3.bf16.msra.mxu0 %v2451_v17 }
 0x627   : > { %1378 = vadd.xlane.f32.xlu0 %v1377_v15 }
 0x62b   : > { %1384 = vadd.xlane.f32.xlu0 %v1383_v19 }
 0x6ac   : > { %v1382_v5 = vpop.xlane.xlu0 %1381 }
 0x6ad   : > { %v1388_v23 = vmul.f32 0.03125, %v1382_v5 }
 0x6af   : > { %v1392_v61 = vadd.f32 1e-12, %v1388_v23 }
 0x6b0   : > { %v1376_v45 = vpop.xlane.xlu0 %1375 }
 0x6b1   : > { %v1386_v25 = vmul.f32 0.03125, %v1376_v45 }
 0x6b3   : > { %v1390_v30 = vadd.f32 1e-12, %v1386_v25 }
 0x6b4   : > { %v1379_v22 = vpop.xlane.xlu0 %1378 }
 0x6b5   : > { %2516 = vrsqrt.f32 %v1390_v30  ;;  %v1387_v11 = vmul.f32 0.03125, %v1379_v22 }
 0x6b6   : > { %2518 = vrsqrt.f32 %v1392_v61 }
 0x6b7   : > { %v1391_v31 = vadd.f32 1e-12, %v1387_v11 }
 0x6b8   : > { %v1385_v35 = vpop.xlane.xlu0 %1384 }
 0x6b9   : > { %2520 = vrsqrt.f32 %v1391_v31  ;;  %v1389_v14 = vmul.f32 0.03125, %v1385_v35 }
 0x6bb   : > { %v1393_v16 = vadd.f32 1e-12, %v1389_v14 }
 0x6bd   : > { %2522 = vrsqrt.f32 %v1393_v16 }
 0x6bf   : > { %v2517_v21 = vpop.eup %2516 }
 0x6c0   : > { %v1398_v32 = vmul.f32 %v2517_v21, %v1366_v7  ;;  %v2519_v55 = vpop.eup %2518 }
 0x6c1   : > { %v1400_v33 = vmul.f32 %v2519_v55, %v1368_v9 }
 0x6c2   : > { %v1406_v49 = vmul.f32 %v1405_v26, %v1398_v32 }
 0x6c3   : > { %v2521_v41 = vpop.eup %2520  ;;  %v1408_v36 = vmul.f32 %v1405_v26, %v1400_v33 }
 0x6c4   : > { %v1399_v48 = vmul.f32 %v2521_v41, %v1367_v63  ;;  %v3135_v38 = vadd.f32 %v1413_v39, %v1406_v49 }
 0x6c5   : > { %v3141_v43 = vadd.f32 %v1413_v39, %v1408_v36 }
 0x6c6   : > { %v1407_v50 = vmul.f32 %v1405_v26, %v1399_v48 }
 0x6c7   : > { %v2523_v34 = vpop.eup %2522 }
 0x6c8   : > { %v1401_v44 = vmul.f32 %v2523_v34, %v1369_v18  ;;  %v3137_v29 = vadd.f32 %v1413_v39, %v1407_v50  ;;  %v1546_v50 = vsub.s32 3, %v3110_v56 }
 0x6ca   : > { %v1409_v37 = vmul.f32 %v1405_v26, %v1401_v44  ;;  %v1418_v54 = vpack.c.bf16 %v3137_v29, %v3135_v38  ;;  %v1547_v34 = vrot.slane %v3114_v46, %v1546_v50 }
 0x6cc   : > { %v3143_v47 = vadd.f32 %v1413_v39, %v1409_v37  ;;  %2332 = vmatprep.mubr.msk.bf16.mxu1 %vm676_vm1, %v1418_v54 }
 0x6ce   : > { %v1419_v60 = vpack.c.bf16 %v3143_v47, %v3141_v43 }
 0x6d0   : > { %2333 = vmatmul.mubr.msk.bf16.vlgmr.msra.gmra.mrb[20].mxu1 %vm676_vm1, %v1419_v60 }
 0x7a3   : > { %v2334_v59 = vpop.f32.mrb[20].mxu1 }
 0x7a4   : > { %v1492_v6 = vadd.f32 %v2334_v59, %v2175_v51  ;;  %v1483_v53 = vpop.f32.mrb[21].mxu1 }
 0x7a5   : > { %v1484_v3 = vadd.f32 %v2175_v51, %v1483_v53  ;;  %v2335_v52 = vpop.f32.mrb[22].mxu1 }
 0x7a6   : > { %v1504_v58 = vmul.f32 0.044715, %v1492_v6  ;;  %v1495_v7 = vadd.f32 %v2335_v52, %v2175_v51  ;;  %v1486_v28 = vpop.f32.mrb[23].mxu1  ;;  %v1500_v16 = vmul.f32 0.5, %v1492_v6 }
 0x7a7   : > { %v1502_v9 = vmul.f32 0.044715, %v1484_v3  ;;  %v1487_v57 = vadd.f32 %v2175_v51, %v1486_v28  ;;  %v1498_v32 = vmul.f32 0.5, %v1484_v3 }
 0x7a8   : > { %v1508_v4 = vmul.f32 %v1504_v58, %v1492_v6  ;;  %v1505_v63 = vmul.f32 0.044715, %v1495_v7  ;;  %v1501_v0 = vmul.f32 0.5, %v1495_v7 }
 0x7a9   : > { %v1506_v27 = vmul.f32 %v1502_v9, %v1484_v3  ;;  %v1503_v10 = vmul.f32 0.044715, %v1487_v57  ;;  %v1499_v55 = vmul.f32 0.5, %v1487_v57 }
 0x7aa   : > { %v1512_v1 = vmul.f32 %v1508_v4, %v1492_v6  ;;  %v1509_v18 = vmul.f32 %v1505_v63, %v1495_v7 }
 0x7ab   : > { %v1510_v13 = vmul.f32 %v1506_v27, %v1484_v3  ;;  %v1507_v2 = vmul.f32 %v1503_v10, %v1487_v57 }
 0x7ac   : > { %v1516_v15 = vadd.f32 %v1512_v1, %v1492_v6  ;;  %v1513_v24 = vmul.f32 %v1509_v18, %v1495_v7 }
 0x7ad   : > { %v1514_v19 = vadd.f32 %v1510_v13, %v1484_v3  ;;  %v1511_v20 = vmul.f32 %v1507_v2, %v1487_v57 }
 0x7ae   : > { %v1520_v8 = vmul.f32 0.7978846, %v1516_v15  ;;  %v1517_v5 = vadd.f32 %v1513_v24, %v1495_v7 }
 0x7af   : > { %v1518_v23 = vmul.f32 0.7978846, %v1514_v19  ;;  %v1515_v45 = vadd.f32 %v1511_v20, %v1487_v57 }
 0x7b0   : > { %2524 = vtanh.f32 %v1520_v8  ;;  %v1521_v25 = vmul.f32 0.7978846, %v1517_v5 }
 0x7b1   : > { %2526 = vtanh.f32 %v1518_v23  ;;  %v1519_v61 = vmul.f32 0.7978846, %v1515_v45 }
 0x7b2   : > { %2528 = vtanh.f32 %v1521_v25 }
 0x7b3   : > { %2530 = vtanh.f32 %v1519_v61 }
 0x7ba   : > { %v2525_v30 = vpop.eup %2524 }
 0x7bb   : > { %v2527_v22 = vpop.eup %2526  ;;  %v1528_v11 = vadd.f32 1.0, %v2525_v30 }
 0x7bc   : > { %v2529_v31 = vpop.eup %2528  ;;  %v1526_v35 = vadd.f32 1.0, %v2527_v22 }
 0x7bd   : > { %v2531_v14 = vpop.eup %2530  ;;  %v1529_v21 = vadd.f32 1.0, %v2529_v31  ;;  %v1532_v42 = vmul.f32 %v1528_v11, %v1500_v16 }
 0x7be   : > { %v1527_v26 = vadd.f32 1.0, %v2531_v14  ;;  %v1530_v33 = vmul.f32 %v1526_v35, %v1498_v32  ;;  %v1686_v35 = vsub.s32 4, %v3110_v56 }
 0x7bf   : > { %v1533_v41 = vmul.f32 %v1529_v21, %v1501_v0  ;;  %v1694_v0 = vsub.s32 5, %v3110_v56 }
 0x7c0   : > { %v1531_v48 = vmul.f32 %v1527_v26, %v1499_v55  ;;  %v1687_v21 = vrot.slane %v3114_v46, %v1686_v35 }
 0x7c1   : > { %v1535_v49 = vpack.c.bf16 %v1533_v41, %v1532_v42  ;;  %v1695_v55 = vrot.slane %v3114_v46, %v1694_v0  ;;  %v2540_v46 = vld [vmem:[%s3319_s15] sm:$0xff] (!%p2186_p8)  }
 0x7c2   : > { %v1534_v39 = vpack.c.bf16 %v1531_v48, %v1530_v33 }
 0x7c4   : > { %2344 = vmatprep.mubr.msk.bf16.mxu0 %vm1572_vm2, %v1534_v39 }
 0x7c5   : > { %2345 = vmatmul.mubr.msk.bf16.vlgmr.msra.gmra.mrb[20].mxu0 %vm1572_vm2, %v1535_v49 }
 0x898   : > { %v2346_v36 = vpop.f32.mrb[20].mxu0 }
 0x899   : > { %v1613_v44 = vpop.f32.mrb[21].mxu0  ;;  %v1622_v51 = vadd.f32 %v2346_v36, %v1547_v34 }
 0x89a   : > { %v1614_v37 = vadd.f32 %v1613_v44, %v1547_v34  ;;  %v2347_v54 = vpop.f32.mrb[22].mxu0 }
 0x89b   : > { %v1625_v60 = vadd.f32 %v2347_v54, %v1547_v34  ;;  %v1616_v62 = vpop.f32.mrb[23].mxu0  ;;  %v1630_v52 = vadd.f32 %v1622_v51, %v3141_v43 }
 0x89c   : > { %v1617_v12 = vadd.f32 %v1616_v62, %v1547_v34  ;;  %v1628_v40 = vadd.f32 %v1614_v37, %v3135_v38  ;;  %v2600_v62 = vmov (!%p2186_p8), 0.0  }
 0x89d   : > { %v1631_v17 = vadd.f32 %v1625_v60, %v3143_v47  ;;  %v1638_v58 = vsel %vm676_vm1, %v1630_v52, 0.0  ;;  %2348 = vmatprep.subr.bf16.mxu0 (!%p2186_p8), %v2600_v62  ;;  %2356 = vmatprep.subr.bf16.mxu1 (!%p2186_p8), %v2600_v62 }
 0x89e   : > { %v1632_v59 = vsel %vm676_vm1, %v1628_v40, 0.0  ;;  %v1629_v6 = vadd.f32 %v1617_v12, %v3137_v29  ;;  %v2541_v12 = vld [vmem:[%s3320_s12 + $0x8] sm:$0xff] (!%p2186_p8)   ;;  %2349 = vmatpush3.bf16.msra.mxu0 (!%p2186_p8), %v2540_v46  ;;  %2352 = vmatprep.mubr.msk.bf16.mxu0 (!%p2186_p8), %vm2601_vm3, %v2600_v62 }
 0x89f   : > { %1633 = vadd.xlane.f32.xlu0 %v1632_v59  ;;  %v1641_v53 = vsel %vm676_vm1, %v1631_v17, 0.0  ;;  %2350 = vmatprep.subr.bf16.mxu0 (!%p2186_p8), %v2600_v62  ;;  %v2544_v59 = vld [vmem:[%s3321_s27 + $0x10] sm:$0xff] (!%p2186_p8)  }
 0x8a0   : > { %1642 = vadd.xlane.f32.xlu1 %v1641_v53  ;;  %v1635_v3 = vsel %vm676_vm1, %v1629_v6, 0.0  ;;  %2372 = vmatprep.mubr.msk.bf16.mxu1 (!%p2186_p8), %vm2601_vm3, %v2600_v62  ;;  %v2546_v53 = vld [vmem:[%s3321_s27 + $0x20] sm:$0xff] (!%p2186_p8)  }
 0x8a2   : > { %2351 = vmatpush3.bf16.msra.mxu0 (!%p2186_p8), %v2541_v12 }
 0x8a3   : > { %1636 = vadd.xlane.f32.xlu0 %v1635_v3  ;;  %2376 = vmatprep.subr.bf16.mxu0 (!%p2186_p8), %v2600_v62  ;;  %v2547_v3 = vld [vmem:[%s3321_s27 + $0x28] sm:$0xff] (!%p2186_p8)  }
 0x8a7   : > { %1639 = vadd.xlane.f32.xlu0 %v1638_v58  ;;  %v2549_v58 = vld [vmem:[%s3321_s27 + $0x38] sm:$0xff] (!%p2186_p8)  }
 0x92c   : > { %v1634_v38 = vpop.xlane.xlu0 %1633 }
 0x92d   : > { %v1644_v7 = vmul.f32 0.03125, %v1634_v38  ;;  %v1643_v47 = vpop.xlane.xlu1 %1642  ;;  %v2550_v38 = vld [vmem:[%s3322_s29] sm:$0xff] (!%p2186_p8)  }
 0x92e   : > { %v1647_v9 = vmul.f32 0.03125, %v1643_v47  ;;  %v2552_v47 = vld [vmem:[%s3323_s23 + $0x10] sm:$0xff] (!%p2186_p8)  }
 0x92f   : > { %v1648_v28 = vsub.f32 %v1628_v40, %v1644_v7  ;;  %v2542_v40 = vld [vmem:[%s3321_s27] sm:$0xff] (!%p2186_p8)   ;;  %v2551_v7 = vld [vmem:[%s3323_s23 + $0x8] sm:$0xff] (!%p2186_p8)  }
 0x930   : > { %v1637_v57 = vpop.xlane.xlu0 %1636  ;;  %v1651_v63 = vsub.f32 %v1631_v17, %v1647_v9  ;;  %2357 = vmatpush3.bf16.msra.mxu1 (!%p2186_p8), %v2542_v40  ;;  %v2543_v17 = vld [vmem:[%s3321_s27 + $0x8] sm:$0xff] (!%p2186_p8)   ;;  %v2554_v9 = vld [vmem:[%s3323_s23 + $0x20] sm:$0xff] (!%p2186_p8)  }
 0x931   : > { %v1645_v4 = vmul.f32 0.03125, %v1637_v57  ;;  %v1652_v29 = vmul.f32 %v1648_v28, %v1648_v28  ;;  %2358 = vmatprep.subr.bf16.mxu1 (!%p2186_p8), %v2600_v62  ;;  %v2555_v57 = vld [vmem:[%s3323_s23 + $0x28] sm:$0xff] (!%p2186_p8)  }
 0x932   : > { %v1655_v15 = vmul.f32 %v1651_v63, %v1651_v63 }
 0x933   : > { %v1649_v27 = vsub.f32 %v1629_v6, %v1645_v4  ;;  %v1656_v10 = vsel %vm676_vm1, %v1652_v29, 0.0  ;;  %v2545_v6 = vld [vmem:[%s3321_s27 + $0x18] sm:$0xff] (!%p2186_p8)   ;;  %v1708_v4 = vld [vmem:[%s3324_s26] sm:$0x7] (!%p2186_p8) }
 0x934   : > { %1657 = vadd.xlane.f32.xlu0 %v1656_v10  ;;  %v1640_v1 = vpop.xlane.xlu0 %1639  ;;  %v1665_v19 = vsel %vm676_vm1, %v1655_v15, 0.0  ;;  %2359 = vmatpush3.bf16.msra.mxu1 (!%p2186_p8), %v2543_v17  ;;  %v1836_v15 = vrot.slane (!%p2186_p8), %v1708_v4, 1 }
 0x935   : > { %v1646_v18 = vmul.f32 0.03125, %v1640_v1  ;;  %v1653_v43 = vmul.f32 %v1649_v27, %v1649_v27  ;;  %2360 = vmatprep.subr.bf16.mxu1 (!%p2186_p8), %v2600_v62 }
 0x937   : > { %v1650_v13 = vsub.f32 %v1630_v52, %v1646_v18  ;;  %v1659_v2 = vsel %vm676_vm1, %v1653_v43, 0.0  ;;  %v2548_v52 = vld [vmem:[%s3321_s27 + $0x30] sm:$0xff] (!%p2186_p8)  }
 0x938   : > { %1660 = vadd.xlane.f32.xlu1 %v1659_v2  ;;  %2361 = vmatpush3.bf16.msra.mxu1 (!%p2186_p8), %v2544_v59  ;;  %v2557_v2 = vld [vmem:[%s3323_s23 + $0x38] sm:$0xff] (!%p2186_p8)  }
 0x939   : > { %v1654_v24 = vmul.f32 %v1650_v13, %v1650_v13  ;;  %2362 = vmatprep.subr.bf16.mxu1 (!%p2186_p8), %v2600_v62 }
 0x93b   : > { %v1662_v20 = vsel %vm676_vm1, %v1654_v24, 0.0 }
 0x93c   : > { %1666 = vadd.xlane.f32.xlu1 %v1665_v19  ;;  %1663 = vadd.xlane.f32.xlu0 %v1662_v20 }
 0x93d   : > { %2363 = vmatpush3.bf16.msra.mxu1 (!%p2186_p8), %v2545_v6 }
 0x93e   : > { %2364 = vmatprep.subr.bf16.mxu1 (!%p2186_p8), %v2600_v62 }
 0x941   : > { %2365 = vmatpush3.bf16.msra.mxu1 (!%p2186_p8), %v2546_v53 }
 0x942   : > { %2366 = vmatprep.subr.bf16.mxu1 (!%p2186_p8), %v2600_v62 }
 0x945   : > { %2367 = vmatpush3.bf16.msra.mxu1 (!%p2186_p8), %v2547_v3 }
 0x946   : > { %2368 = vmatprep.subr.bf16.mxu1 (!%p2186_p8), %v2600_v62 }
 0x949   : > { %2369 = vmatpush3.bf16.msra.mxu1 (!%p2186_p8), %v2548_v52 }
 0x94a   : > { %2370 = vmatprep.subr.bf16.mxu1 (!%p2186_p8), %v2600_v62 }
 0x94d   : > { %2371 = vmatpush3.bf16.msra.mxu1 (!%p2186_p8), %v2549_v58 }
 0x9c1   : > { %v1658_v8 = vpop.xlane.xlu0 %1657 }
 0x9c2   : > { %v1668_v5 = vmul.f32 0.03125, %v1658_v8 }
 0x9c4   : > { %v1672_v23 = vadd.f32 1e-12, %v1668_v5 }
 0x9c5   : > { %v1661_v45 = vpop.xlane.xlu1 %1660 }
 0x9c6   : > { %2532 = vrsqrt.f32 %v1672_v23  ;;  %v1669_v25 = vmul.f32 0.03125, %v1661_v45 }
 0x9c8   : > { %v1673_v61 = vadd.f32 1e-12, %v1669_v25  ;;  %v1944_v25 = vrot.slane (!%p2186_p8), %v1708_v4, 2 }
 0x9c9   : > { %v1667_v30 = vpop.xlane.xlu1 %1666  ;;  %v1664_v22 = vpop.xlane.xlu0 %1663 }
 0x9ca   : > { %2534 = vrsqrt.f32 %v1673_v61  ;;  %v1671_v11 = vmul.f32 0.03125, %v1667_v30  ;;  %v1670_v31 = vmul.f32 0.03125, %v1664_v22 }
 0x9cc   : > { %v1675_v14 = vadd.f32 1e-12, %v1671_v11  ;;  %v1674_v16 = vadd.f32 1e-12, %v1670_v31 }
 0x9ce   : > { %2536 = vrsqrt.f32 %v1675_v14 }
 0x9cf   : > { %2538 = vrsqrt.f32 %v1674_v16 }
 0x9d0   : > { %v2533_v32 = vpop.eup %2532 }
 0x9d1   : > { %v1680_v26 = vmul.f32 %v2533_v32, %v1648_v28  ;;  %v2553_v28 = vld [vmem:[%s3323_s23 + $0x18] sm:$0xff] (!%p2186_p8)  }
 0x9d3   : > { %v1688_v42 = vmul.f32 %v1687_v21, %v1680_v26 }
 0x9d4   : > { %v2535_v41 = vpop.eup %2534 }
 0x9d5   : > { %v1696_v33 = vadd.f32 %v1695_v55, %v1688_v42  ;;  %v1681_v48 = vmul.f32 %v2535_v41, %v1649_v27 }
 0x9d7   : > { %1700 = vst.msk [vmem:[#allocation2] sm:$0xff] %vm676_vm1, %v1696_v33  ;;  %v1689_v49 = vmul.f32 %v1687_v21, %v1681_v48  ;;  %v1709_v51 = vpack.c.bf16 (!%p2186_p8), %v1696_v33, %v1696_v33 }
 0x9d8   : > { %v2537_v39 = vpop.eup %2536 }
 0x9d9   : > { %v2539_v50 = vpop.eup %2538  ;;  %v1697_v34 = vadd.f32 %v1695_v55, %v1689_v49  ;;  %v1683_v36 = vmul.f32 %v2537_v39, %v1651_v63  ;;  %2353 = vmatmul.mubr.msk.bf16.vlgmr.msra.gmra.mrb[0].mxu0 (!%p2186_p8), %vm676_vm1, %v1709_v51 }
 0x9da   : > { %v1682_v56 = vmul.f32 %v2539_v50, %v1650_v13  ;;  %1707 = sbr.rel (%p2186_p8) target bundleno = 3172 (0xc64), region = 84  ;;  %2392 = vmatprep.mubr.msk.bf16.mxu0 (!%p2186_p8), %vm2601_vm3, %v2600_v62  ;;  %2377 = vmatpush3.bf16.msra.mxu0 (!%p2186_p8), %v2550_v38  ;;  %v2556_v13 = vld [vmem:[%s3323_s23 + $0x30] sm:$0xff] (!%p2186_p8)  }
 0x9db   : > { %1701 = vst.msk [vmem:[#allocation2 + $0x8] sm:$0xff] %vm676_vm1, %v1697_v34  ;;  %v1691_v44 = vmul.f32 %v1687_v21, %v1683_v36  ;;  %2378 = vmatprep.subr.bf16.mxu0 (!%p2186_p8), %v2600_v62 }
 0x9dc   : > { %v1690_v37 = vmul.f32 %v1687_v21, %v1682_v56 }
 0x9dd   : > { %v1699_v54 = vadd.f32 %v1695_v55, %v1691_v44 }
 0x9de   : > { %v1698_v60 = vadd.f32 %v1695_v55, %v1690_v37  ;;  %2379 = vmatpush3.bf16.msra.mxu0 (!%p2186_p8), %v2551_v7 }
 0x9df   : > { %1703 = vst.msk [vmem:[#allocation2 + $0x18] sm:$0xff] %vm676_vm1, %v1699_v54  ;;  %2380 = vmatprep.subr.bf16.mxu0 (!%p2186_p8), %v2600_v62 }
 0x9e0   : > { %1702 = vst.msk [vmem:[#allocation2 + $0x10] sm:$0xff] %vm676_vm1, %v1698_v60 }
 0x9e2   : > { %2381 = vmatpush3.bf16.msra.mxu0 %v2552_v47 }
 0x9e3   : > { %2382 = vmatprep.subr.bf16.mxu0 %v2600_v62 }
 0x9e6   : > { %2383 = vmatpush3.bf16.msra.mxu0 %v2553_v28 }
 0x9e7   : > { %2384 = vmatprep.subr.bf16.mxu0 %v2600_v62 }
 0x9ea   : > { %2385 = vmatpush3.bf16.msra.mxu0 %v2554_v9 }
 0x9eb   : > { %2386 = vmatprep.subr.bf16.mxu0 %v2600_v62 }
 0x9ee   : > { %2387 = vmatpush3.bf16.msra.mxu0 %v2555_v57 }
 0x9ef   : > { %2388 = vmatprep.subr.bf16.mxu0 %v2600_v62 }
 0x9f2   : > { %2389 = vmatpush3.bf16.msra.mxu0 %v2556_v13 }
 0x9f3   : > { %2390 = vmatprep.subr.bf16.mxu0 %v2600_v62 }
 0x9f6   : > { %2391 = vmatpush3.bf16.msra.mxu0 %v2557_v2 }
 0xaac   : > { %v1763_v29 = vpop.f32.mrb[0].mxu0 }
 0xaad   : > { %v1764_v63 = vadd.f32 %v1763_v29, %v1708_v4  ;;  %v2354_v27 = vpop.f32.mrb[1].mxu0 }
 0xaae   : > { %v1766_v10 = vpop.f32.mrb[2].mxu0 }
 0xaaf   : > { %v1769_v1 = vmax.f32 %v1764_v63, 0.0  ;;  %v2355_v18 = vpop.f32.mrb[3].mxu0 }
 0xab1   : > { %v1770_v43 = vpack.c.bf16 %v1769_v1, %v1769_v1 }
 0xab3   : > { %2373 = vmatmul.mubr.bf16.vlgmr.msra.gmra.mrb[0].mxu1 %v1770_v43 }
 0xb86   : > { %v1872_v24 = vpop.f32.mrb[0].mxu1 }
 0xb87   : > { %v1873_v19 = vadd.f32 %v1872_v24, %v1836_v15  ;;  %v2374_v20 = vpop.f32.mrb[1].mxu1 }
 0xb88   : > { %v1875_v8 = vpop.f32.mrb[2].mxu1 }
 0xb89   : > { %v1878_v5 = vmax.f32 %v1873_v19, 0.0  ;;  %v2375_v23 = vpop.f32.mrb[3].mxu1 }
 0xb8b   : > { %v1879_v45 = vpack.c.bf16 %v1878_v5, %v1878_v5 }
 0xb8d   : > { %2393 = vmatmul.mubr.bf16.vlgmr.msra.gmra.mrb[4].mxu0 %v1879_v45 }
 0xc60   : > { %v1980_v61 = vpop.f32.mrb[4].mxu0 }
 0xc61   : > { %v1981_v30 = vadd.f32 %v1980_v61, %v1944_v25  ;;  %v2394_v22 = vpop.f32.mrb[5].mxu0 }
 0xc62   : > { %v1983_v11 = vpop.f32.mrb[6].mxu0 }
 0xc63   : > { %1986 = vst [vmem:[%s614_s28] sm:$0x1] %v1981_v30  ;;  %v2395_v31 = vpop.f32.mrb[7].mxu0 }
 0xc64 PF: > { %s3325_s25 = sld [smem:[#allocation5_spill]]  ;;  %s3326_s29 = sld [smem:[#allocation3_spill]] }
 0xc65   : > { %s3327_s30 = sld [smem:[#allocation4_spill]]  ;;  %s3328_s15 = sld [smem:[#allocation6_spill]] }
 0xc66   : > { %s3329_s16 = sld [smem:[#allocation7_spill]] }
 0xc6a   : > { %s24_s17 = sadd.s32 1, %s3325_s25  }
 0xc6b   : > { %p21_p9 = scmp.ge.s32.totalorder %s24_s17, 26  }
 0xc6d   :  { %23 = sbr.rel (!%p21_p9) target bundleno = 7 (0x7), region = 138 }

</bundles_post_ra>
